<compile_context>
chip_gen: v7x
topology: tpu7x:2x2x1
jax: 0.10.0
libtpu: 0.0.40
codegen_flags: <defaults>
</compile_context>

<pallas_src>
import jax
import jax.numpy as jnp
from jax import lax
from jax.experimental import pallas as pl
from jax.experimental.pallas import tpu as pltpu


def transition_kernel(x_ref, scale_ref, shift_ref, w_ref, o_ref):
    # x_ref block: (1, TH, W, C)  -- NHWC tile (TH rows of one batch element)
    x = x_ref[0]                                    # (TH, W, C)
    TH, W, C = x.shape
    THp, Wp = TH // 2, W // 2

    scale = scale_ref[...]                          # (1, C) -> broadcasts along TH, W
    shift = shift_ref[...]                          # (1, C)

    # Folded BatchNorm (running stats) + ReLU on the VPU.
    h = jnp.maximum(x * scale + shift, 0.0)         # (TH, W, C), f32

    # 2x2 / stride-2 average pool on the VPU (pool commutes with the 1x1 conv).
    # H-pool: split the leading dim (free) and reduce the pair axis.
    hh = h.reshape(THp, 2, W, C).sum(axis=1)        # (THp, W, C)
    # W-pool: split the sublane dim and reduce the pair axis.
    pooled = hh.reshape(THp, Wp, 2, C).sum(axis=2)  # (THp, Wp, C)
    # (the 1/4 averaging factor is folded into the conv weight in the wrapper)

    # 1x1 conv as a single MXU matmul at quarter resolution: bf16 in, f32 accumulate.
    flat = pooled.reshape(THp * Wp, C).astype(w_ref.dtype)          # (S, C)
    y = lax.dot_general(
        w_ref[...], flat,                                           # (Cout, C) x (S, C)
        dimension_numbers=(((1,), (1,)), ((), ())),                 # contract C with C
        preferred_element_type=jnp.float32,
    )                                                               # (Cout, S)

    # Output block is NCHW-flattened: (1, Cout, THp*Wp) -- spatial on lanes (lane-dense).
    o_ref[0] = y.astype(o_ref.dtype)


def _choose_tile_h(H, W, C, itemsize, max_block_bytes=8 * 1024 * 1024):
    """Full-height blocks when they comfortably fit VMEM (double-buffered, well under the
    32 MiB scoped default on v7x); otherwise pick an even divisor of H whose flattened
    output tile stays a multiple of 128 lanes."""
    if H * W * C * itemsize <= max_block_bytes:
        return H
    Wp = W // 2
    for th in range(H - 2, 1, -2):
        if H % th == 0 and ((th // 2) * Wp) % 128 == 0:
            return th
    return H


def transition_forward(x_nchw, gamma, beta, running_mean, running_var, w_conv, eps=1e-5):
    """x_nchw: (N, C, H, W). w_conv: (Cout, Cin) or (Cout, Cin, 1, 1)."""
    N, C, H, W = x_nchw.shape
    assert H % 2 == 0 and W % 2 == 0, "AvgPool2d(2,2) path assumes even H, W"
    w2 = w_conv.reshape(w_conv.shape[0], -1)                 # (Cout, C)
    Cout = w2.shape[0]
    Hp, Wp = H // 2, W // 2

    # Fold BatchNorm (eval/running-stat) into per-channel scale/shift; lane-aligned (1, C).
    inv_std = 1.0 / jnp.sqrt(running_var.astype(jnp.float32) + eps)
    scale = (gamma.astype(jnp.float32) * inv_std).reshape(1, C)
    shift = (beta.astype(jnp.float32)
             - running_mean.astype(jnp.float32) * gamma.astype(jnp.float32) * inv_std
             ).reshape(1, C)
    # bf16 conv weight; the 1/4 of the 2x2 average pool is folded in here.
    w_bf16 = (w2.astype(jnp.float32) * 0.25).astype(jnp.bfloat16)

    # Single layout change: NCHW -> NHWC so channels sit on the lane/contraction axis.
    # The kernel writes NCHW-flat output, so there is no output-side transpose.
    # TODO(synk): keep activations NHWC in the surrounding model to drop this transpose.
    x_nhwc = jnp.transpose(x_nchw, (0, 2, 3, 1))             # (N, H, W, C)

    TH = _choose_tile_h(H, W, C, x_nhwc.dtype.itemsize)
    n_th = H // TH
    THp = TH // 2

    out_flat = pl.pallas_call(
        transition_kernel,
        out_shape=jax.ShapeDtypeStruct((N, Cout, Hp * Wp), x_nchw.dtype),
        grid_spec=pltpu.PrefetchScalarGridSpec(
            num_scalar_prefetch=0,
            grid=(N, n_th),
            in_specs=[
                pl.BlockSpec((1, TH, W, C), lambda n, t: (n, t, 0, 0)),
                pl.BlockSpec((1, C), lambda n, t: (0, 0)),
                pl.BlockSpec((1, C), lambda n, t: (0, 0)),
                pl.BlockSpec((Cout, C), lambda n, t: (0, 0)),
            ],
            out_specs=pl.BlockSpec((1, Cout, THp * Wp), lambda n, t: (n, 0, t)),
        ),
        compiler_params=pltpu.CompilerParams(
            dimension_semantics=("parallel", "parallel")),
    )(x_nhwc, scale, shift, w_bf16)

    # Free (contiguous) reshape back to (N, Cout, Hp, Wp) -- matches PyTorch NCHW.
    return out_flat.reshape(N, Cout, Hp, Wp)


def reference_forward(x_nchw, gamma, beta, running_mean, running_var, w_conv, eps=1e-5):
    xb = (x_nchw - running_mean[None, :, None, None]) / jnp.sqrt(
        running_var[None, :, None, None] + eps
    )
    xb = xb * gamma[None, :, None, None] + beta[None, :, None, None]
    xb = jnp.maximum(xb, 0.0)
    y = jnp.einsum("nchw,oc->nohw", xb, w_conv.reshape(w_conv.shape[0], -1))
    N, O, H, W = y.shape
    y = y.reshape(N, O, H // 2, 2, W // 2, 2).mean(axis=(3, 5))
    return y


if __name__ == "__main__":
    N, C, H, W = 2, 4, 16, 16
    Cout = C // 2

    key = jax.random.PRNGKey(0)
    kx, kw, kg, kb, km, kv = jax.random.split(key, 6)

    x = jax.random.normal(kx, (N, C, H, W), dtype=jnp.float32)
    w_conv = jax.random.normal(kw, (Cout, C), dtype=jnp.float32) * 0.1   # (Cout, Cin, 1, 1) squeezed
    gamma = 1.0 + 0.1 * jax.random.normal(kg, (C,), dtype=jnp.float32)
    beta = 0.1 * jax.random.normal(kb, (C,), dtype=jnp.float32)
    running_mean = 0.1 * jax.random.normal(km, (C,), dtype=jnp.float32)
    running_var = 1.0 + 0.1 * jax.random.uniform(kv, (C,), dtype=jnp.float32)

    out = transition_forward(x, gamma, beta, running_mean, running_var, w_conv)
    out = jax.block_until_ready(out)

    ref = reference_forward(x, gamma, beta, running_mean, running_var, w_conv)
    assert out.shape == (N, Cout, H // 2, W // 2), out.shape
    max_err = float(jnp.max(jnp.abs(out - ref)))
    # bf16 matmul operands (f32 accumulation) -> tolerance set accordingly.
    assert jnp.allclose(out, ref, atol=1e-2, rtol=1e-2), max_err

    print("KERNEL_OK")
</pallas_src>

<mosaic_0001>
module attributes {stable_mosaic.version = 11 : i64} {
  func.func @transition_kernel(%arg0: i32, %arg1: i32, %arg2: memref<1x16x16x4xf32, #tpu.memory_space<vmem>>, %arg3: memref<1x4xf32, #tpu.memory_space<vmem>>, %arg4: memref<1x4xf32, #tpu.memory_space<vmem>>, %arg5: memref<2x4xbf16, #tpu.memory_space<vmem>>, %arg6: memref<1x2x64xf32, #tpu.memory_space<vmem>>) attributes {dimension_semantics = [#tpu.dimension_semantics<parallel>, #tpu.dimension_semantics<parallel>], iteration_bounds = array<i64: 2, 1>, scalar_prefetch = 0 : i64, scratch_operands = 0 : i64, tpu.core_type = #tpu.core_type<tc>, window_params = [{transform_indices = @transform_0, window_bounds = array<i64: 1, 16, 16, 4>}, {pipeline_mode = #tpu.pipeline_mode<synchronous>, transform_indices = @transform_1, window_bounds = array<i64: 1, 4>}, {pipeline_mode = #tpu.pipeline_mode<synchronous>, transform_indices = @transform_2, window_bounds = array<i64: 1, 4>}, {pipeline_mode = #tpu.pipeline_mode<synchronous>, transform_indices = @transform_3, window_bounds = array<i64: 2, 4>}, {transform_indices = @transform_4, window_bounds = array<i64: 1, 2, 64>}]} {
    %c0 = arith.constant 0 : index
    %c0_0 = arith.constant 0 : index
    %c0_1 = arith.constant 0 : index
    %c0_2 = arith.constant 0 : index
    %0 = vector.load %arg2[%c0, %c0_0, %c0_1, %c0_2] : memref<1x16x16x4xf32, #tpu.memory_space<vmem>>, vector<1x16x16x4xf32>
    %1 = vector.shape_cast %0 : vector<1x16x16x4xf32> to vector<16x16x4xf32>
    %c0_3 = arith.constant 0 : index
    %c0_4 = arith.constant 0 : index
    %2 = vector.load %arg3[%c0_3, %c0_4] : memref<1x4xf32, #tpu.memory_space<vmem>>, vector<1x4xf32>
    %c0_5 = arith.constant 0 : index
    %c0_6 = arith.constant 0 : index
    %3 = vector.load %arg4[%c0_5, %c0_6] : memref<1x4xf32, #tpu.memory_space<vmem>>, vector<1x4xf32>
    %4 = vector.shape_cast %2 : vector<1x4xf32> to vector<1x1x4xf32>
    %5 = vector.broadcast %4 : vector<1x1x4xf32> to vector<16x16x4xf32>
    %6 = arith.mulf %1, %5 : vector<16x16x4xf32>
    %7 = vector.shape_cast %3 : vector<1x4xf32> to vector<1x1x4xf32>
    %8 = vector.broadcast %7 : vector<1x1x4xf32> to vector<16x16x4xf32>
    %9 = arith.addf %6, %8 : vector<16x16x4xf32>
    %cst = arith.constant 0.000000e+00 : f32
    %10 = vector.broadcast %cst : f32 to vector<16x16x4xf32>
    %11 = arith.maximumf %9, %10 : vector<16x16x4xf32>
    %12 = vector.shape_cast %11 : vector<16x16x4xf32> to vector<8x2x16x4xf32>
    %cst_7 = arith.constant dense<0.000000e+00> : vector<8x16x4xf32>
    %13 = vector.multi_reduction <add>, %12, %cst_7 [1] : vector<8x2x16x4xf32> to vector<8x16x4xf32>
    %14 = vector.shape_cast %13 : vector<8x16x4xf32> to vector<8x8x2x4xf32>
    %cst_8 = arith.constant dense<0.000000e+00> : vector<8x8x4xf32>
    %15 = vector.multi_reduction <add>, %14, %cst_8 [2] : vector<8x8x2x4xf32> to vector<8x8x4xf32>
    %16 = vector.shape_cast %15 : vector<8x8x4xf32> to vector<64x4xf32>
    %17 = arith.truncf %16 : vector<64x4xf32> to vector<64x4xbf16>
    %c0_9 = arith.constant 0 : index
    %c0_10 = arith.constant 0 : index
    %18 = vector.load %arg5[%c0_9, %c0_10] : memref<2x4xbf16, #tpu.memory_space<vmem>>, vector<2x4xbf16>
    %cst_11 = arith.constant dense<0.000000e+00> : vector<2x64xf32>
    %19 = tpu.matmul %18, %17, %cst_11 {dimension_numbers = #tpu.dot_dimension_numbers<[1], [1], [0], [0], [0, 0, 1, 0], [], []>} : vector<2x4xbf16>, vector<64x4xbf16>, vector<2x64xf32> -> vector<2x64xf32>
    %c0_12 = arith.constant 0 : index
    %c0_13 = arith.constant 0 : index
    %c0_14 = arith.constant 0 : index
    %20 = vector.load %arg6[%c0_12, %c0_13, %c0_14] : memref<1x2x64xf32, #tpu.memory_space<vmem>>, vector<1x2x64xf32>
    %21 = vector.shape_cast %20 : vector<1x2x64xf32> to vector<2x64xf32>
    %22 = vector.shape_cast %19 : vector<2x64xf32> to vector<1x2x64xf32>
    tpu.vector_store %arg6[%c0_12, %c0_13, %c0_14], %22 {strides = array<i32>} : memref<1x2x64xf32, #tpu.memory_space<vmem>>, vector<1x2x64xf32>,
    return
  }
  func.func @transform_0(%arg0: i32, %arg1: i32) -> (i32, i32, i32, i32) {
    %c0_i32 = arith.constant 0 : i32
    %c0_i32_0 = arith.constant 0 : i32
    %c0_i32_1 = arith.constant 0 : i32
    return %arg0, %arg1, %c0_i32, %c0_i32_0 : i32, i32, i32, i32
  }
  func.func @transform_1(%arg0: i32, %arg1: i32) -> (i32, i32) {
    %c0_i32 = arith.constant 0 : i32
    %c0_i32_0 = arith.constant 0 : i32
    %c0_i32_1 = arith.constant 0 : i32
    return %c0_i32, %c0_i32_0 : i32, i32
  }
  func.func @transform_2(%arg0: i32, %arg1: i32) -> (i32, i32) {
    %c0_i32 = arith.constant 0 : i32
    %c0_i32_0 = arith.constant 0 : i32
    %c0_i32_1 = arith.constant 0 : i32
    return %c0_i32, %c0_i32_0 : i32, i32
  }
  func.func @transform_3(%arg0: i32, %arg1: i32) -> (i32, i32) {
    %c0_i32 = arith.constant 0 : i32
    %c0_i32_0 = arith.constant 0 : i32
    %c0_i32_1 = arith.constant 0 : i32
    return %c0_i32, %c0_i32_0 : i32, i32
  }
  func.func @transform_4(%arg0: i32, %arg1: i32) -> (i32, i32, i32) {
    %c0_i32 = arith.constant 0 : i32
    %c0_i32_0 = arith.constant 0 : i32
    return %arg0, %c0_i32, %arg1 : i32, i32, i32
  }
}

</mosaic_0001>

<bundles_post_ra>
// kernel: tpu_custom_call.1
= control target key start
LH: loop header
LB: loop body
LE: loop exit
PB: predicated region body
PF: predicated region fallthrough
CT: control target
= control target key end

     0   :  { %9 = vsyncpa [#allocation3], 0  ;;  %s2479_s0 = inlined_call_operand.vmem [shape: f32[2,16,16,4], index: 0, kind: input, shape index: {}]   ;;  %s2480_s1 = inlined_call_operand.vmem [shape: f32[1,4], index: 1, kind: input, shape index: {}]   ;;  %s2481_s2 = inlined_call_operand.vmem [shape: f32[1,4], index: 2, kind: input, shape index: {}]   ;;  %s2482_s3 = inlined_call_operand.vmem [shape: bf16[2,4], index: 3, kind: input, shape index: {}]   ;;  %s2483_s4 = inlined_call_operand.hbm [shape: f32[2,2,64], index: 4, kind: output, shape index: {}]  }
   0x1   :  { %11 = vsyncpa [#allocation3 + $0x1], 0  ;;  %s1833_s15 = smov 0   ;;  %s1835_s16 = smov 0  }
   0x2   :  { %s1837_s17 = smov 0   ;;  %s1839_s18 = smov 0  }
   0x3   :  { %s1841_s19 = smov 0   ;;  %s1843_s20 = smov 0  }
   0x4 LB: > { %s1631_s21 = sadd.s32 4294967295, %s1802_s20   ;;  %s1632_s22 = sadd.s32 4294967294, %s1802_s20   ;;  %s1802_s20 = sphi %s1843_s20, %s17_s20   ;;  %s1798_s19 = sphi %s1841_s19, %s2490_s19   ;;  %s1794_s18 = sphi %s1839_s18, %s2489_s18   ;;  %s1790_s17 = sphi %s1837_s17, %s2488_s17   ;;  %s1786_s16 = sphi %s1835_s16, %s2487_s16   ;;  %s1782_s15 = sphi %s1833_s15, %s2486_s15  }
   0x5   : > { %s29_s23 = sadd.s32 1, %s1798_s19  ;;  %s129_s24 = sadd.s32 1, %s1790_s17 }
   0x6   : > { %p31_p0 = scmp.ge.s32.totalorder %s29_s23, 2  ;;  %p139_p1 = scmp.ne.s32.totalorder %s1790_s17, %s1786_s16 }
   0x7   : > { %p140_p2 = scmp.eq.s32.totalorder %s1631_s21, 1  ;;  %p145_p3 = scmp.ne.s32.totalorder %s1786_s16, %s1782_s15 }
   0x8   : > { %s2492_s23 = smov (%p31_p0, %s29_s23), 0  ;;  %p146_p5 = scmp.eq.s32.totalorder %s1632_s22, 1 }
   0x9   : > { %p1873_p4 = por %p140_p2, %p139_p1  ;;  %s124_s26 = ssub.s32 %s1798_s19, %s2492_s23 }
   0xa   : > { %p1635_p6 = scmp.ge.s32.totalorder %s1802_s20, 1  ;;  %p127_p7 = scmp.eq.s32.totalorder %s124_s26, 0 }
   0xb   : > { %p1880_p8 = por %p146_p5, %p145_p3  ;;  %p187_p9 = scmp.lt.s32.totalorder %s1802_s20, 3 }
   0xc   : > { %s1886_s28 = scalar_select %p127_p7, %s1790_s17, %s129_s24  }
   0xd   : > { %p188_p10 = pnand %p1635_p6, %p187_p9 }
   0xe   : > { %p219_p11 = scmp.lt.s32.totalorder (!%p188_p10), %s1794_s18, 1  ;;  %v441_v0 = vlaneseq (!%p188_p10)  ;;  %v1804_v1 = vmov (!%p188_p10), 0.0   ;;  %v1805_v2 = vmov (!%p188_p10), 1983009808   ;;  %v1894_v4 = vld [vmem:[%s2480_s1] ss:$0 sm:$0xff] (!%p188_p10) }
   0xf   : > { %191 = sbr.rel (%p188_p10) target bundleno = 483 (0x1e3), region = 36  ;;  %1652 = vmatprep.subr.bf16.mxu0 (!%p188_p10), %v1804_v1  ;;  %v439_v3 = vunpack.c.l.s4 (!%p188_p10), %v1805_v2  ;;  %v1904_v7 = vld [vmem:[%s2481_s2] ss:$0 sm:$0xff] (!%p188_p10)  ;;  %vm372_vm0 = vcmask (!%p188_p10), 31744   ;;  %vm773_vm1 = vcmask (!%p188_p10), 25600   ;;  %vm1415_vm2 = vcmask (!%p188_p10), 1041409  }
  0x10   : > { %v442_v6 = vshrl.u32 (!%p188_p10), %v441_v0, 7  ;;  %vm1417_vm3 = vcmask (!%p188_p10), 1042434   ;;  %vm1419_vm4 = vcmask (!%p188_p10), 1043459   ;;  %vm1421_vm5 = vcmask (!%p188_p10), 1044484   ;;  %s215_s26 = sand.u32 (!%p188_p10), 1, %s1786_s16  }
  0x11   : > { %v440_v5 = vunpack.c.0.s8 (!%p188_p10), %v439_v3  ;;  %vm1423_vm6 = vcmask (!%p188_p10), 1045509   ;;  %vm1425_vm7 = vcmask (!%p188_p10), 1046534   ;;  %vm1427_vm8 = vcmask (!%p188_p10), 1047559   ;;  %s1540_s10 = scalar_lea.sflag (!%p188_p10), [#allocation3], %s215_s26 }
  0x12   : > { %vm1806_vm9 = vmmov (!%p188_p10), 0   ;;  %vm1537_vm10 = vcmask (!%p188_p10), 517120  }
  0x13   : > { %v1920_v22 = vsub.s32 (!%p188_p10), %v440_v5, %v442_v6  ;;  %1660 = vmatprep.mubr.msk.bf16.mxu0 (!%p188_p10), %vm1806_vm9, %v1804_v1 }
  0x16   : > { %s220_s29 = scalar_select %p219_p11, %s1794_s18, 1 }
  0x18   : > { %s1646_s30 = sshll.u32 %s220_s29, 8  ;;  %s1636_s29 = sshll.u32 %s215_s26, 1 }
  0x19   : > { %s1899_s9 = scalar_lea.vmem %s2479_s0, %s1646_s30  ;;  %s1643_s30 = sshll.u32 %s1794_s18, 5 }
  0x1a   : > { %v230_v8 = vld [vmem:[%s1899_s9] sm:$0xff]  ;;  %v231_v9 = vld [vmem:[%s1899_s9 + $0x8] sm:$0xff]  ;;  %v232_v10 = vld [vmem:[%s1899_s9 + $0x10] sm:$0xff]  ;;  %s217_s5 = scalar_lea.vmem [#allocation2], %s1636_s29  ;;  %s1807_s18 = smov [#allocation2]  }
  0x1b   : > { %v233_v11 = vld [vmem:[%s1899_s9 + $0x18] sm:$0xff]  ;;  %v234_v12 = vld [vmem:[%s1899_s9 + $0x20] sm:$0xff]  ;;  %v235_v13 = vld [vmem:[%s1899_s9 + $0x28] sm:$0xff]  ;;  %v270_v14 = vmul.f32 %v1894_v4, %v230_v8  ;;  %v271_v15 = vmul.f32 %v1894_v4, %v231_v9  ;;  %v272_v16 = vmul.f32 %v1894_v4, %v232_v10  ;;  %s1554_s6 = sshll.u32 %s217_s5, 4  ;;  %s1728_s12 = sshll.u32 %s1807_s18, 4  ;;  %s2434_s6 = int_to_ptr.vmem [resolvable:$true] %s1554_s6  ;;  %s1729_s12 = int_to_ptr.vmem [resolvable:$false] %s1728_s12 }
  0x1c   : > { %v236_v17 = vld [vmem:[%s1899_s9 + $0x30] sm:$0xff]  ;;  %v237_v18 = vld [vmem:[%s1899_s9 + $0x38] sm:$0xff]  ;;  %v273_v19 = vmul.f32 %v1894_v4, %v233_v11  ;;  %v274_v20 = vmul.f32 %v1894_v4, %v234_v12  ;;  %v275_v21 = vmul.f32 %v1894_v4, %v235_v13  ;;  %v238_v43 = vld [vmem:[%s1899_s9 + $0x40] sm:$0xff]  ;;  %s1724_s11 = scalar_lea.vmem %s2434_s6, 32  ;;  %s1730_s13 = scalar_lea.vmem %s1729_s12, 64 }
  0x1d   : > { %v276_v23 = vmul.f32 %v1894_v4, %v236_v17  ;;  %v277_v24 = vmul.f32 %v1894_v4, %v237_v18  ;;  %v308_v25 = vadd.f32 %v1904_v7, %v270_v14  ;;  %v309_v26 = vadd.f32 %v1904_v7, %v271_v15  ;;  %v239_v44 = vld [vmem:[%s1899_s9 + $0x48] sm:$0xff]  ;;  %p1725_p12 = scmp.ne.s32.totalorder %s2434_s6, %s1724_s11  ;;  %p1731_p1 = scmp.lt.s32.totalorder %s2434_s6, %s1729_s12 }
  0x1e   : > { %v310_v27 = vadd.f32 %v1904_v7, %v272_v16  ;;  %v311_v28 = vadd.f32 %v1904_v7, %v273_v19  ;;  %v312_v29 = vadd.f32 %v1904_v7, %v274_v20  ;;  %v313_v30 = vadd.f32 %v1904_v7, %v275_v21  ;;  %p1732_p2 = scmp.lt.s32.totalorder %s1730_s13, %s1724_s11 }
  0x1f   : > { %v314_v31 = vadd.f32 %v1904_v7, %v276_v23  ;;  %v315_v32 = vadd.f32 %v1904_v7, %v277_v24  ;;  %v340_v33 = vmax.f32 %v308_v25, 0.0  ;;  %v341_v34 = vmax.f32 %v309_v26, 0.0  ;;  %p1726_p13 = pnand %p1725_p12, %p1873_p4 }
  0x20   : > { %v342_v35 = vmax.f32 %v310_v27, 0.0  ;;  %v343_v36 = vmax.f32 %v311_v28, 0.0  ;;  %v344_v37 = vmax.f32 %v312_v29, 0.0  ;;  %v345_v38 = vmax.f32 %v313_v30, 0.0  ;;  %p1733_p3 = por %p1732_p2, %p1731_p1 }
  0x21   : > { %v346_v39 = vmax.f32 %v314_v31, 0.0  ;;  %v347_v40 = vmax.f32 %v315_v32, 0.0  ;;  %v373_v41 = vsel %vm372_vm0, %v340_v33, 0.0  ;;  %v376_v42 = vsel %vm372_vm0, %v341_v34, 0.0  ;;  %p1727_p0 = pneg %p1726_p13 }
  0x22   : > { %v374_v45 = vsel %vm372_vm0, %v342_v35, 0.0  ;;  %v377_v46 = vsel %vm372_vm0, %v343_v36, 0.0  ;;  %v379_v47 = vsel %vm372_vm0, %v344_v37, 0.0  ;;  %v382_v48 = vsel %vm372_vm0, %v345_v38, 0.0 }
  0x23   : > { %v375_v49 = vadd.f32 %v374_v45, %v373_v41  ;;  %v378_v50 = vadd.f32 %v377_v46, %v376_v42  ;;  %v380_v51 = vsel %vm372_vm0, %v346_v39, 0.0  ;;  %v383_v52 = vsel %vm372_vm0, %v347_v40, 0.0  ;;  %p1734_p5 = pnand %p1733_p3, %p1727_p0 }
  0x24   : > { %v381_v53 = vadd.f32 %v380_v51, %v379_v47  ;;  %v384_v54 = vadd.f32 %v383_v52, %v382_v48  ;;  %v1943_v55 = vmul.f32 %v1894_v4, %v238_v43  ;;  %v1946_v56 = vmul.f32 %v1894_v4, %v239_v44 }
  0x25   : > { %v437_v57 = vcombine.high %v375_v49, %v375_v49  ;;  %v444_v58 = vrot.slane %v375_v49, %v1920_v22  ;;  %v454_v59 = vcombine.high %v378_v50, %v378_v50  ;;  %v461_v60 = vrot.slane %v378_v50, %v1920_v22 }
  0x26   : > { %v471_v61 = vcombine.high %v381_v53, %v381_v53  ;;  %v1951_v62 = vrot.slane %v381_v53, %v1920_v22  ;;  %v488_v63 = vcombine.high %v384_v54, %v384_v54  ;;  %v1954_v0 = vrot.slane %v384_v54, %v1920_v22 }
  0x27   : > { %v451_v2 = vrot.slane %v437_v57, %v1920_v22  ;;  %v452_v3 = vcombine.high %v444_v58, %v444_v58  ;;  %v468_v5 = vrot.slane %v454_v59, %v1920_v22  ;;  %v469_v6 = vcombine.high %v461_v60, %v461_v60 }
  0x28   : > { %v1959_v8 = vrot.slane %v471_v61, %v1920_v22  ;;  %v486_v9 = vcombine.high %v1951_v62, %v1951_v62  ;;  %v1964_v10 = vrot.slane %v488_v63, %v1920_v22  ;;  %v503_v11 = vcombine.high %v1954_v0, %v1954_v0 }
  0x29   : > { %v453_v12 = vcombine.high %v451_v2, %v451_v2  ;;  %v470_v13 = vcombine.high %v468_v5, %v468_v5  ;;  %v774_v14 = vsel %vm773_vm1, %v444_v58, 0.0  ;;  %v781_v15 = vsel %vm773_vm1, %v452_v3, 0.0 }
  0x2a   : > { %v487_v16 = vcombine.high %v1959_v8, %v1959_v8  ;;  %v504_v17 = vcombine.high %v1964_v10, %v1964_v10  ;;  %v775_v18 = vrot.slane %v774_v14, 4  ;;  %v782_v19 = vrot.slane %v781_v15, 4 }
  0x2b   : > { %v788_v20 = vsel %vm773_vm1, %v451_v2, 0.0  ;;  %v795_v21 = vsel %vm773_vm1, %v453_v12, 0.0  ;;  %v802_v23 = vsel %vm773_vm1, %v461_v60, 0.0  ;;  %v809_v24 = vsel %vm773_vm1, %v469_v6, 0.0 }
  0x2c   : > { %v776_v25 = vadd.f32 %v775_v18, %v774_v14  ;;  %v783_v26 = vadd.f32 %v782_v19, %v781_v15  ;;  %v789_v27 = vrot.slane %v788_v20, 4  ;;  %v796_v28 = vrot.slane %v795_v21, 4 }
  0x2d   : > { %v803_v29 = vrot.slane %v802_v23, 4  ;;  %v810_v30 = vrot.slane %v809_v24, 4  ;;  %v816_v31 = vsel %vm773_vm1, %v468_v5, 0.0  ;;  %v823_v32 = vsel %vm773_vm1, %v470_v13, 0.0 }
  0x2e   : > { %v777_v33 = vrot.slane %v776_v25, 2  ;;  %v784_v34 = vrot.slane %v783_v26, 2  ;;  %v790_v35 = vadd.f32 %v789_v27, %v788_v20  ;;  %v797_v36 = vadd.f32 %v796_v28, %v795_v21 }
  0x2f   : > { %v804_v37 = vadd.f32 %v803_v29, %v802_v23  ;;  %v811_v38 = vadd.f32 %v810_v30, %v809_v24  ;;  %v817_v39 = vrot.slane %v816_v31, 4  ;;  %v824_v40 = vrot.slane %v823_v32, 4 }
  0x30   : > { %v778_v41 = vadd.f32 %v777_v33, %v776_v25  ;;  %v785_v42 = vadd.f32 %v784_v34, %v783_v26  ;;  %v791_v43 = vrot.slane %v790_v35, 2  ;;  %v798_v44 = vrot.slane %v797_v36, 2 }
  0x31   : > { %v805_v45 = vrot.slane %v804_v37, 2  ;;  %v812_v46 = vrot.slane %v811_v38, 2  ;;  %v818_v47 = vadd.f32 %v817_v39, %v816_v31  ;;  %v825_v48 = vadd.f32 %v824_v40, %v823_v32 }
  0x32   : > { %v779_v49 = vrot.slane %v778_v41, 1  ;;  %v786_v50 = vrot.slane %v785_v42, 1  ;;  %v792_v51 = vadd.f32 %v791_v43, %v790_v35  ;;  %v799_v52 = vadd.f32 %v798_v44, %v797_v36 }
  0x33   : > { %v806_v53 = vadd.f32 %v805_v45, %v804_v37  ;;  %v813_v54 = vadd.f32 %v812_v46, %v811_v38  ;;  %v819_v57 = vrot.slane %v818_v47, 2  ;;  %v826_v58 = vrot.slane %v825_v48, 2 }
  0x34   : > { %v1980_v59 = vadd.f32 %v779_v49, %v778_v41  ;;  %v1982_v60 = vadd.f32 %v786_v50, %v785_v42  ;;  %v793_v61 = vrot.slane %v792_v51, 1  ;;  %v800_v63 = vrot.slane %v799_v52, 1 }
  0x35   : > { %v807_v2 = vrot.slane %v806_v53, 1  ;;  %v814_v3 = vrot.slane %v813_v54, 1  ;;  %v820_v5 = vadd.f32 %v819_v57, %v818_v47  ;;  %v827_v6 = vadd.f32 %v826_v58, %v825_v48 }
  0x36   : > { %v1984_v12 = vadd.f32 %v793_v61, %v792_v51  ;;  %v1986_v13 = vadd.f32 %v800_v63, %v799_v52  ;;  %v830_v14 = vsel %vm773_vm1, %v1951_v62, 0.0  ;;  %v837_v15 = vsel %vm773_vm1, %v486_v9, 0.0 }
  0x37   : > { %v1991_v18 = vadd.f32 %v807_v2, %v806_v53  ;;  %v1993_v19 = vadd.f32 %v814_v3, %v813_v54  ;;  %v821_v20 = vrot.slane %v820_v5, 1  ;;  %v828_v21 = vrot.slane %v827_v6, 1 }
  0x38   : > { %v831_v23 = vrot.slane %v830_v14, 4  ;;  %v838_v24 = vrot.slane %v837_v15, 4  ;;  %v844_v25 = vsel %vm773_vm1, %v1959_v8, 0.0  ;;  %v851_v26 = vsel %vm773_vm1, %v487_v16, 0.0 }
  0x39   : > { %v1998_v27 = vadd.f32 %v821_v20, %v820_v5  ;;  %v2000_v28 = vadd.f32 %v828_v21, %v827_v6  ;;  %v845_v62 = vrot.slane %v844_v25, 4  ;;  %v852_v29 = vrot.slane %v851_v26, 4 }
  0x3a   : > { %v832_v9 = vadd.f32 %v831_v23, %v830_v14  ;;  %v839_v30 = vadd.f32 %v838_v24, %v837_v15  ;;  %v858_v31 = vsel %vm773_vm1, %v1954_v0, 0.0  ;;  %v865_v32 = vsel %vm773_vm1, %v503_v11, 0.0 }
  0x3b   : > { %v846_v33 = vadd.f32 %v845_v62, %v844_v25  ;;  %v853_v8 = vadd.f32 %v852_v29, %v851_v26  ;;  %v859_v34 = vrot.slane %v858_v31, 4  ;;  %v866_v16 = vrot.slane %v865_v32, 4 }
  0x3c   : > { %v833_v35 = vrot.slane %v832_v9, 2  ;;  %v840_v36 = vrot.slane %v839_v30, 2  ;;  %v872_v37 = vsel %vm773_vm1, %v1964_v10, 0.0  ;;  %v879_v38 = vsel %vm773_vm1, %v504_v17, 0.0 }
  0x3d   : > { %v847_v39 = vrot.slane %v846_v33, 2  ;;  %v854_v40 = vrot.slane %v853_v8, 2  ;;  %v860_v41 = vadd.f32 %v859_v34, %v858_v31  ;;  %v867_v0 = vadd.f32 %v866_v16, %v865_v32 }
  0x3e   : > { %v834_v42 = vadd.f32 %v833_v35, %v832_v9  ;;  %v841_v11 = vadd.f32 %v840_v36, %v839_v30  ;;  %v873_v43 = vrot.slane %v872_v37, 4  ;;  %v880_v44 = vrot.slane %v879_v38, 4 }
  0x3f   : > { %v848_v45 = vadd.f32 %v847_v39, %v846_v33  ;;  %v855_v46 = vadd.f32 %v854_v40, %v853_v8  ;;  %v861_v47 = vrot.slane %v860_v41, 2  ;;  %v868_v48 = vrot.slane %v867_v0, 2 }
  0x40   : > { %v835_v49 = vrot.slane %v834_v42, 1  ;;  %v842_v50 = vrot.slane %v841_v11, 1  ;;  %v874_v51 = vadd.f32 %v873_v43, %v872_v37  ;;  %v881_v52 = vadd.f32 %v880_v44, %v879_v38 }
  0x41   : > { %v849_v53 = vrot.slane %v848_v45, 1  ;;  %v856_v10 = vrot.slane %v855_v46, 1  ;;  %v862_v54 = vadd.f32 %v861_v47, %v860_v41  ;;  %v869_v17 = vadd.f32 %v868_v48, %v867_v0  ;;  %v240_v41 = vld [vmem:[%s1899_s9 + $0x50] sm:$0xff]  ;;  %v241_v0 = vld [vmem:[%s1899_s9 + $0x58] sm:$0xff] }
  0x42   : > { %v836_v57 = vadd.f32 %v835_v49, %v834_v42  ;;  %v843_v58 = vadd.f32 %v842_v50, %v841_v11  ;;  %v875_v61 = vrot.slane %v874_v51, 2  ;;  %v882_v63 = vrot.slane %v881_v52, 2 }
  0x43   : > { %v850_v2 = vadd.f32 %v849_v53, %v848_v45  ;;  %v857_v3 = vadd.f32 %v856_v10, %v855_v46  ;;  %v863_v5 = vrot.slane %v862_v54, 1  ;;  %v870_v6 = vrot.slane %v869_v17, 1  ;;  %v242_v45 = vld [vmem:[%s1899_s9 + $0x60] sm:$0xff]  ;;  %v243_v46 = vld [vmem:[%s1899_s9 + $0x68] sm:$0xff] }
  0x44   : > { %v876_v14 = vadd.f32 %v875_v61, %v874_v51  ;;  %v883_v15 = vadd.f32 %v882_v63, %v881_v52  ;;  %v1222_v20 = vpack.c.bf16 %v1980_v59, %v1980_v59  ;;  %v1223_v21 = vpack.c.bf16 %v1982_v60, %v1982_v60  ;;  %v244_v51 = vld [vmem:[%s1899_s9 + $0x70] sm:$0xff]  ;;  %v245_v52 = vld [vmem:[%s1899_s9 + $0x78] sm:$0xff] }
  0x45   : > { %v864_v23 = vadd.f32 %v863_v5, %v862_v54  ;;  %v871_v24 = vadd.f32 %v870_v6, %v869_v17  ;;  %v1224_v25 = vpack.c.bf16 %v1984_v12, %v1984_v12  ;;  %v1225_v26 = vpack.c.bf16 %v1986_v13, %v1986_v13 }
  0x46   : > { %v877_v62 = vrot.slane %v876_v14, 1  ;;  %v884_v29 = vrot.slane %v883_v15, 1  ;;  %v1226_v9 = vpack.c.bf16 %v1991_v18, %v1991_v18  ;;  %v1227_v59 = vpack.c.bf16 %v1993_v19, %v1993_v19 }
  0x47   : > { %v1228_v60 = vpack.c.bf16 %v1998_v27, %v1998_v27  ;;  %v1229_v30 = vpack.c.bf16 %v2000_v28, %v2000_v28  ;;  %v1230_v12 = vpack.c.bf16 %v836_v57, %v836_v57  ;;  %v1231_v31 = vpack.c.bf16 %v843_v58, %v843_v58 }
  0x48   : > { %v878_v13 = vadd.f32 %v877_v62, %v876_v14  ;;  %v885_v32 = vadd.f32 %v884_v29, %v883_v15  ;;  %v1232_v33 = vpack.c.bf16 %v850_v2, %v850_v2  ;;  %v1233_v8 = vpack.c.bf16 %v857_v3, %v857_v3 }
  0x49   : > { %v1234_v18 = vpack.c.bf16 %v864_v23, %v864_v23  ;;  %v1235_v34 = vpack.c.bf16 %v871_v24, %v871_v24  ;;  %v1351_v19 = vunpack.c.l.b16 %v1222_v20  ;;  %v1352_v16 = vunpack.c.l.b16 %v1223_v21 }
  0x4a   : > { %v1236_v27 = vpack.c.bf16 %v878_v13, %v878_v13  ;;  %v1237_v35 = vpack.c.bf16 %v885_v32, %v885_v32  ;;  %v1353_v28 = vunpack.c.l.b16 %v1224_v25  ;;  %v1354_v36 = vunpack.c.l.b16 %v1225_v26 }
  0x4b   : > { %v1355_v37 = vunpack.c.l.b16 %v1226_v9  ;;  %v1356_v38 = vunpack.c.l.b16 %v1227_v59  ;;  %v1357_v39 = vunpack.c.l.b16 %v1228_v60  ;;  %v1358_v40 = vunpack.c.l.b16 %v1229_v30 }
  0x4c   : > { %v1359_v42 = vunpack.c.l.b16 %v1230_v12  ;;  %v1360_v11 = vunpack.c.l.b16 %v1231_v31  ;;  %v1361_v43 = vunpack.c.l.b16 %v1232_v33  ;;  %v1362_v44 = vunpack.c.l.b16 %v1233_v8 }
  0x4d   : > { %v1363_v47 = vunpack.c.l.b16 %v1234_v18  ;;  %v1364_v48 = vunpack.c.l.b16 %v1235_v34  ;;  %v1365_v49 = vunpack.c.l.b16 %v1236_v27  ;;  %v1366_v50 = vunpack.c.l.b16 %v1237_v35 }
  0x4e   : > { %v1416_v53 = vsel %vm1415_vm2, %v1352_v16, %v1351_v19  ;;  %v1429_v10 = vsel %vm1415_vm2, %v1360_v11, %v1359_v42  ;;  %v280_v54 = vmul.f32 %v1894_v4, %v240_v41  ;;  %v281_v17 = vmul.f32 %v1894_v4, %v241_v0 }
  0x4f   : > { %v1418_v57 = vsel %vm1417_vm3, %v1353_v28, %v1416_v53  ;;  %v1430_v58 = vsel %vm1417_vm3, %v1361_v43, %v1429_v10  ;;  %v282_v61 = vmul.f32 %v1894_v4, %v242_v45  ;;  %v283_v63 = vmul.f32 %v1894_v4, %v243_v46 }
  0x50   : > { %v1420_v2 = vsel %vm1419_vm4, %v1354_v36, %v1418_v57  ;;  %v1431_v3 = vsel %vm1419_vm4, %v1362_v44, %v1430_v58  ;;  %v284_v5 = vmul.f32 %v1894_v4, %v244_v51  ;;  %v285_v6 = vmul.f32 %v1894_v4, %v245_v52 }
  0x51   : > { %v1422_v14 = vsel %vm1421_vm5, %v1355_v37, %v1420_v2  ;;  %v1432_v15 = vsel %vm1421_vm5, %v1363_v47, %v1431_v3  ;;  %v316_v20 = vadd.f32 %v1904_v7, %v1943_v55  ;;  %v317_v21 = vadd.f32 %v1904_v7, %v1946_v56 }
  0x52   : > { %v1424_v23 = vsel %vm1423_vm6, %v1356_v38, %v1422_v14  ;;  %v1433_v24 = vsel %vm1423_vm6, %v1364_v48, %v1432_v15  ;;  %v318_v25 = vadd.f32 %v1904_v7, %v280_v54  ;;  %v319_v26 = vadd.f32 %v1904_v7, %v281_v17 }
  0x53   : > { %v1426_v62 = vsel %vm1425_vm7, %v1357_v39, %v1424_v23  ;;  %v1434_v29 = vsel %vm1425_vm7, %v1365_v49, %v1433_v24  ;;  %v320_v9 = vadd.f32 %v1904_v7, %v282_v61  ;;  %v321_v59 = vadd.f32 %v1904_v7, %v283_v63  ;;  %v246_v39 = vld [vmem:[%s1899_s9 + $0x80] sm:$0xff] }
  0x54   : > { %v1428_v55 = vsel %vm1427_vm8, %v1358_v40, %v1426_v62  ;;  %v1435_v56 = vsel %vm1427_vm8, %v1366_v50, %v1434_v29  ;;  %v322_v60 = vadd.f32 %v1904_v7, %v284_v5  ;;  %v323_v30 = vadd.f32 %v1904_v7, %v285_v6  ;;  %v247_v40 = vld [vmem:[%s1899_s9 + $0x88] sm:$0xff] }
  0x55   : > { %v1478_v12 = vpack.c.b16 %v1435_v56, %v1428_v55  ;;  %v348_v31 = vmax.f32 %v316_v20, 0.0  ;;  %v349_v13 = vmax.f32 %v317_v21, 0.0  ;;  %v350_v32 = vmax.f32 %v318_v25, 0.0 }
  0x56   : > { %v351_v33 = vmax.f32 %v319_v26, 0.0  ;;  %v352_v8 = vmax.f32 %v320_v9, 0.0  ;;  %v353_v18 = vmax.f32 %v321_v59, 0.0  ;;  %v354_v34 = vmax.f32 %v322_v60, 0.0 }
  0x57   : > { %v1486_v19 = vsel %vm372_vm0, %v1478_v12, 0  ;;  %v355_v16 = vmax.f32 %v323_v30, 0.0  ;;  %v385_v27 = vsel %vm372_vm0, %v348_v31, 0.0  ;;  %v386_v35 = vsel %vm372_vm0, %v350_v32, 0.0 }
  0x58   : > { %1653 = vmatpush3.bf16.xpose.msra.mxu0 %v1486_v19  ;;  %v387_v28 = vadd.f32 %v386_v35, %v385_v27  ;;  %v388_v36 = vsel %vm372_vm0, %v349_v13, 0.0  ;;  %v389_v37 = vsel %vm372_vm0, %v351_v33, 0.0  ;;  %v391_v38 = vsel %vm372_vm0, %v352_v8, 0.0 }
  0x59   : > { %1654 = vmatprep.subr.bf16.mxu0 %v1804_v1  ;;  %v390_v41 = vadd.f32 %v389_v37, %v388_v36  ;;  %v392_v0 = vsel %vm372_vm0, %v354_v34, 0.0  ;;  %v394_v42 = vsel %vm372_vm0, %v353_v18, 0.0  ;;  %v395_v11 = vsel %vm372_vm0, %v355_v16, 0.0 }
  0x5a   : > { %v393_v43 = vadd.f32 %v392_v0, %v391_v38  ;;  %v396_v44 = vadd.f32 %v395_v11, %v394_v42  ;;  %v505_v45 = vcombine.high %v387_v28, %v387_v28  ;;  %v512_v46 = vrot.slane %v387_v28, %v1920_v22 }
  0x5b   : > { %v522_v47 = vcombine.high %v390_v41, %v390_v41  ;;  %v529_v48 = vrot.slane %v390_v41, %v1920_v22  ;;  %v2081_v49 = vmul.f32 %v1894_v4, %v246_v39  ;;  %v2084_v50 = vmul.f32 %v1894_v4, %v247_v40 }
  0x5c   : > { %v519_v51 = vrot.slane %v505_v45, %v1920_v22  ;;  %v520_v52 = vcombine.high %v512_v46, %v512_v46  ;;  %v539_v53 = vcombine.high %v393_v43, %v393_v43  ;;  %v2088_v10 = vrot.slane %v393_v43, %v1920_v22 }
  0x5d   : > { %v536_v54 = vrot.slane %v522_v47, %v1920_v22  ;;  %v537_v17 = vcombine.high %v529_v48, %v529_v48  ;;  %v556_v57 = vcombine.high %v396_v44, %v396_v44  ;;  %v2092_v58 = vrot.slane %v396_v44, %v1920_v22 }
  0x5e   : > { %v521_v61 = vcombine.high %v519_v51, %v519_v51  ;;  %v2095_v63 = vrot.slane %v539_v53, %v1920_v22  ;;  %v554_v2 = vcombine.high %v2088_v10, %v2088_v10  ;;  %v886_v3 = vsel %vm773_vm1, %v512_v46, 0.0 }
  0x5f   : > { %v538_v5 = vcombine.high %v536_v54, %v536_v54  ;;  %v2101_v6 = vrot.slane %v556_v57, %v1920_v22  ;;  %v571_v14 = vcombine.high %v2092_v58, %v2092_v58  ;;  %v887_v15 = vrot.slane %v886_v3, 4 }
  0x60   : > { %v555_v20 = vcombine.high %v2095_v63, %v2095_v63  ;;  %v893_v21 = vsel %vm773_vm1, %v520_v52, 0.0  ;;  %v900_v23 = vsel %vm773_vm1, %v519_v51, 0.0  ;;  %v907_v24 = vsel %vm773_vm1, %v521_v61, 0.0 }
  0x61   : > { %v572_v25 = vcombine.high %v2101_v6, %v2101_v6  ;;  %v888_v26 = vadd.f32 %v887_v15, %v886_v3  ;;  %v894_v62 = vrot.slane %v893_v21, 4  ;;  %v901_v29 = vrot.slane %v900_v23, 4 }
  0x62   : > { %v908_v9 = vrot.slane %v907_v24, 4  ;;  %v914_v59 = vsel %vm773_vm1, %v529_v48, 0.0  ;;  %v921_v55 = vsel %vm773_vm1, %v537_v17, 0.0  ;;  %v928_v56 = vsel %vm773_vm1, %v536_v54, 0.0 }
  0x63   : > { %v889_v60 = vrot.slane %v888_v26, 2  ;;  %v895_v30 = vadd.f32 %v894_v62, %v893_v21  ;;  %v902_v12 = vadd.f32 %v901_v29, %v900_v23  ;;  %v915_v31 = vrot.slane %v914_v59, 4 }
  0x64   : > { %v909_v13 = vadd.f32 %v908_v9, %v907_v24  ;;  %v922_v32 = vrot.slane %v921_v55, 4  ;;  %v929_v33 = vrot.slane %v928_v56, 4  ;;  %v935_v8 = vsel %vm773_vm1, %v538_v5, 0.0 }
  0x65   : > { %v890_v18 = vadd.f32 %v889_v60, %v888_v26  ;;  %v896_v34 = vrot.slane %v895_v30, 2  ;;  %v903_v19 = vrot.slane %v902_v12, 2  ;;  %v916_v16 = vadd.f32 %v915_v31, %v914_v59 }
  0x66   : > { %v910_v27 = vrot.slane %v909_v13, 2  ;;  %v923_v35 = vadd.f32 %v922_v32, %v921_v55  ;;  %v930_v28 = vadd.f32 %v929_v33, %v928_v56  ;;  %v936_v36 = vrot.slane %v935_v8, 4 }
  0x67   : > { %v891_v37 = vrot.slane %v890_v18, 1  ;;  %v897_v38 = vadd.f32 %v896_v34, %v895_v30  ;;  %v904_v39 = vadd.f32 %v903_v19, %v902_v12  ;;  %v917_v40 = vrot.slane %v916_v16, 2 }
  0x68   : > { %v911_v41 = vadd.f32 %v910_v27, %v909_v13  ;;  %v924_v0 = vrot.slane %v923_v35, 2  ;;  %v931_v42 = vrot.slane %v930_v28, 2  ;;  %v937_v11 = vadd.f32 %v936_v36, %v935_v8 }
  0x69   : > { %v2116_v43 = vadd.f32 %v891_v37, %v890_v18  ;;  %v898_v44 = vrot.slane %v897_v38, 1  ;;  %v905_v45 = vrot.slane %v904_v39, 1  ;;  %v918_v46 = vadd.f32 %v917_v40, %v916_v16 }
  0x6a   : > { %v912_v47 = vrot.slane %v911_v41, 1  ;;  %v925_v48 = vadd.f32 %v924_v0, %v923_v35  ;;  %v932_v51 = vadd.f32 %v931_v42, %v930_v28  ;;  %v938_v52 = vrot.slane %v937_v11, 2 }
  0x6b   : > { %v2118_v53 = vadd.f32 %v898_v44, %v897_v38  ;;  %v2120_v54 = vadd.f32 %v905_v45, %v904_v39  ;;  %v919_v17 = vrot.slane %v918_v46, 1  ;;  %v942_v57 = vsel %vm773_vm1, %v2088_v10, 0.0 }
  0x6c   : > { %v2124_v61 = vadd.f32 %v912_v47, %v911_v41  ;;  %v926_v3 = vrot.slane %v925_v48, 1  ;;  %v933_v5 = vrot.slane %v932_v51, 1  ;;  %v939_v15 = vadd.f32 %v938_v52, %v937_v11 }
  0x6d   : > { %v2126_v21 = vadd.f32 %v919_v17, %v918_v46  ;;  %v943_v23 = vrot.slane %v942_v57, 4  ;;  %v949_v24 = vsel %vm773_vm1, %v554_v2, 0.0  ;;  %v956_v26 = vsel %vm773_vm1, %v2095_v63, 0.0 }
  0x6e   : > { %v2131_v62 = vadd.f32 %v926_v3, %v925_v48  ;;  %v2133_v29 = vadd.f32 %v933_v5, %v932_v51  ;;  %v940_v9 = vrot.slane %v939_v15, 1  ;;  %v950_v59 = vrot.slane %v949_v24, 4 }
  0x6f   : > { %v944_v10 = vadd.f32 %v943_v23, %v942_v57  ;;  %v957_v55 = vrot.slane %v956_v26, 4  ;;  %v963_v56 = vsel %vm773_vm1, %v555_v20, 0.0  ;;  %v970_v60 = vsel %vm773_vm1, %v2092_v58, 0.0 }
  0x70   : > { %v2138_v30 = vadd.f32 %v940_v9, %v939_v15  ;;  %v951_v12 = vadd.f32 %v950_v59, %v949_v24  ;;  %v964_v2 = vrot.slane %v963_v56, 4  ;;  %v971_v31 = vrot.slane %v970_v60, 4 }
  0x71   : > { %v945_v13 = vrot.slane %v944_v10, 2  ;;  %v958_v63 = vadd.f32 %v957_v55, %v956_v26  ;;  %v977_v32 = vsel %vm773_vm1, %v571_v14, 0.0  ;;  %v984_v33 = vsel %vm773_vm1, %v2101_v6, 0.0 }
  0x72   : > { %v952_v8 = vrot.slane %v951_v12, 2  ;;  %v965_v20 = vadd.f32 %v964_v2, %v963_v56  ;;  %v972_v18 = vadd.f32 %v971_v31, %v970_v60  ;;  %v978_v34 = vrot.slane %v977_v32, 4 }
  0x73   : > { %v946_v19 = vadd.f32 %v945_v13, %v944_v10  ;;  %v959_v16 = vrot.slane %v958_v63, 2  ;;  %v985_v27 = vrot.slane %v984_v33, 4  ;;  %v991_v35 = vsel %vm773_vm1, %v572_v25, 0.0 }
  0x74   : > { %v953_v28 = vadd.f32 %v952_v8, %v951_v12  ;;  %v966_v36 = vrot.slane %v965_v20, 2  ;;  %v973_v58 = vrot.slane %v972_v18, 2  ;;  %v979_v37 = vadd.f32 %v978_v34, %v977_v32 }
  0x75   : > { %v947_v14 = vrot.slane %v946_v19, 1  ;;  %v960_v38 = vadd.f32 %v959_v16, %v958_v63  ;;  %v986_v39 = vadd.f32 %v985_v27, %v984_v33  ;;  %v992_v40 = vrot.slane %v991_v35, 4  ;;  %v248_v27 = vld [vmem:[%s1899_s9 + $0x90] sm:$0xff] }
  0x76   : > { %v954_v41 = vrot.slane %v953_v28, 1  ;;  %v967_v0 = vadd.f32 %v966_v36, %v965_v20  ;;  %v974_v42 = vadd.f32 %v973_v58, %v972_v18  ;;  %v980_v11 = vrot.slane %v979_v37, 2 }
  0x77   : > { %v948_v44 = vadd.f32 %v947_v14, %v946_v19  ;;  %v961_v45 = vrot.slane %v960_v38, 1  ;;  %v987_v46 = vrot.slane %v986_v39, 2  ;;  %v993_v47 = vadd.f32 %v992_v40, %v991_v35  ;;  %v249_v35 = vld [vmem:[%s1899_s9 + $0x98] sm:$0xff]  ;;  %v250_v14 = vld [vmem:[%s1899_s9 + $0xa0] sm:$0xff] }
  0x78   : > { %v955_v48 = vadd.f32 %v954_v41, %v953_v28  ;;  %v968_v6 = vrot.slane %v967_v0, 1  ;;  %v975_v51 = vrot.slane %v974_v42, 1  ;;  %v981_v25 = vadd.f32 %v980_v11, %v979_v37  ;;  %v253_v11 = vld [vmem:[%s1899_s9 + $0xb8] sm:$0xff] }
  0x79   : > { %v962_v52 = vadd.f32 %v961_v45, %v960_v38  ;;  %v988_v17 = vadd.f32 %v987_v46, %v986_v39  ;;  %v994_v57 = vrot.slane %v993_v47, 2  ;;  %v1238_v3 = vpack.c.bf16 %v2116_v43, %v2116_v43  ;;  %v251_v38 = vld [vmem:[%s1899_s9 + $0xa8] sm:$0xff] }
  0x7a   : > { %v969_v5 = vadd.f32 %v968_v6, %v967_v0  ;;  %v976_v15 = vadd.f32 %v975_v51, %v974_v42  ;;  %v982_v23 = vrot.slane %v981_v25, 1  ;;  %v1239_v24 = vpack.c.bf16 %v2118_v53, %v2118_v53  ;;  %v252_v42 = vld [vmem:[%s1899_s9 + $0xb0] sm:$0xff] }
  0x7b   : > { %v989_v26 = vrot.slane %v988_v17, 1  ;;  %v995_v9 = vadd.f32 %v994_v57, %v993_v47  ;;  %v1240_v59 = vpack.c.bf16 %v2120_v54, %v2120_v54  ;;  %v1241_v10 = vpack.c.bf16 %v2124_v61, %v2124_v61 }
  0x7c   : > { %v983_v55 = vadd.f32 %v982_v23, %v981_v25  ;;  %v1242_v56 = vpack.c.bf16 %v2126_v21, %v2126_v21  ;;  %v1243_v43 = vpack.c.bf16 %v2131_v62, %v2131_v62  ;;  %v1244_v60 = vpack.c.bf16 %v2133_v29, %v2133_v29 }
  0x7d   : > { %v990_v12 = vadd.f32 %v989_v26, %v988_v17  ;;  %v996_v53 = vrot.slane %v995_v9, 1  ;;  %v1245_v2 = vpack.c.bf16 %v2138_v30, %v2138_v30  ;;  %v1246_v31 = vpack.c.bf16 %v948_v44, %v948_v44 }
  0x7e   : > { %v1247_v54 = vpack.c.bf16 %v955_v48, %v955_v48  ;;  %v1248_v13 = vpack.c.bf16 %v962_v52, %v962_v52  ;;  %v1249_v61 = vpack.c.bf16 %v969_v5, %v969_v5  ;;  %v1250_v63 = vpack.c.bf16 %v976_v15, %v976_v15 }
  0x7f   : > { %v997_v32 = vadd.f32 %v996_v53, %v995_v9  ;;  %v1251_v21 = vpack.c.bf16 %v983_v55, %v983_v55  ;;  %v1252_v33 = vpack.c.bf16 %v990_v12, %v990_v12  ;;  %v1367_v62 = vunpack.c.l.b16 %v1238_v3 }
  0x80   : > { %v1368_v8 = vunpack.c.l.b16 %v1239_v24  ;;  %v1369_v29 = vunpack.c.l.b16 %v1240_v59  ;;  %v1370_v20 = vunpack.c.l.b16 %v1241_v10  ;;  %v1371_v18 = vunpack.c.l.b16 %v1242_v56 }
  0x81   : > { %v1253_v34 = vpack.c.bf16 %v997_v32, %v997_v32  ;;  %v1372_v30 = vunpack.c.l.b16 %v1243_v43  ;;  %v1373_v19 = vunpack.c.l.b16 %v1244_v60  ;;  %v1374_v16 = vunpack.c.l.b16 %v1245_v2 }
  0x82   : > { %v1375_v28 = vunpack.c.l.b16 %v1246_v31  ;;  %v1376_v36 = vunpack.c.l.b16 %v1247_v54  ;;  %v1377_v58 = vunpack.c.l.b16 %v1248_v13  ;;  %v1378_v37 = vunpack.c.l.b16 %v1249_v61 }
  0x83   : > { %v1379_v39 = vunpack.c.l.b16 %v1250_v63  ;;  %v1380_v40 = vunpack.c.l.b16 %v1251_v21  ;;  %v1381_v41 = vunpack.c.l.b16 %v1252_v33  ;;  %v1382_v0 = vunpack.c.l.b16 %v1253_v34  ;;  %v254_v34 = vld [vmem:[%s1899_s9 + $0xc0] sm:$0xff] }
  0x84   : > { %v1436_v44 = vsel %vm1415_vm2, %v1368_v8, %v1367_v62  ;;  %v1443_v45 = vsel %vm1415_vm2, %v1376_v36, %v1375_v28  ;;  %v288_v46 = vmul.f32 %v1894_v4, %v248_v27  ;;  %v289_v47 = vmul.f32 %v1894_v4, %v249_v35 }
  0x85   : > { %v1437_v48 = vsel %vm1417_vm3, %v1369_v29, %v1436_v44  ;;  %v1444_v6 = vsel %vm1417_vm3, %v1377_v58, %v1443_v45  ;;  %v290_v51 = vmul.f32 %v1894_v4, %v250_v14  ;;  %v291_v25 = vmul.f32 %v1894_v4, %v251_v38 }
  0x86   : > { %v1438_v52 = vsel %vm1419_vm4, %v1370_v20, %v1437_v48  ;;  %v1445_v17 = vsel %vm1419_vm4, %v1378_v37, %v1444_v6  ;;  %v292_v57 = vmul.f32 %v1894_v4, %v252_v42  ;;  %v293_v3 = vmul.f32 %v1894_v4, %v253_v11 }
  0x87   : > { %v1439_v5 = vsel %vm1421_vm5, %v1371_v18, %v1438_v52  ;;  %v1446_v15 = vsel %vm1421_vm5, %v1379_v39, %v1445_v17  ;;  %v324_v23 = vadd.f32 %v1904_v7, %v2081_v49  ;;  %v325_v24 = vadd.f32 %v1904_v7, %v2084_v50  ;;  %v2219_v39 = vld [vmem:[%s2480_s1] ss:$0 sm:$0xff] }
  0x88   : > { %v1440_v26 = vsel %vm1423_vm6, %v1372_v30, %v1439_v5  ;;  %v1447_v9 = vsel %vm1423_vm6, %v1380_v40, %v1446_v15  ;;  %v326_v59 = vadd.f32 %v1904_v7, %v288_v46  ;;  %v327_v10 = vadd.f32 %v1904_v7, %v289_v47  ;;  %v255_v30 = vld [vmem:[%s1899_s9 + $0xc8] sm:$0xff] }
  0x89   : > { %v1441_v4 = vsel %vm1425_vm7, %v1373_v19, %v1440_v26  ;;  %v1448_v55 = vsel %vm1425_vm7, %v1381_v41, %v1447_v9  ;;  %v328_v56 = vadd.f32 %v1904_v7, %v290_v51  ;;  %v329_v43 = vadd.f32 %v1904_v7, %v291_v25 }
  0x8a   : > { %v1442_v49 = vsel %vm1427_vm8, %v1374_v16, %v1441_v4  ;;  %v1449_v50 = vsel %vm1427_vm8, %v1382_v0, %v1448_v55  ;;  %v330_v60 = vadd.f32 %v1904_v7, %v292_v57  ;;  %v331_v12 = vadd.f32 %v1904_v7, %v293_v3 }
  0x8b   : > { %v1479_v53 = vpack.c.b16 %v1449_v50, %v1442_v49  ;;  %v356_v2 = vmax.f32 %v324_v23, 0.0  ;;  %v357_v31 = vmax.f32 %v325_v24, 0.0  ;;  %v358_v54 = vmax.f32 %v326_v59, 0.0 }
  0x8c   : > { %v359_v13 = vmax.f32 %v327_v10, 0.0  ;;  %v360_v61 = vmax.f32 %v328_v56, 0.0  ;;  %v361_v63 = vmax.f32 %v329_v43, 0.0  ;;  %v362_v32 = vmax.f32 %v330_v60, 0.0 }
  0x8d   : > { %v1489_v21 = vsel %vm372_vm0, %v1479_v53, 0  ;;  %v363_v33 = vmax.f32 %v331_v12, 0.0  ;;  %v397_v62 = vsel %vm372_vm0, %v356_v2, 0.0  ;;  %v398_v8 = vsel %vm372_vm0, %v358_v54, 0.0 }
  0x8e   : > { %1655 = vmatpush3.bf16.xpose.msra.mxu0 %v1489_v21  ;;  %v399_v29 = vadd.f32 %v398_v8, %v397_v62  ;;  %v400_v7 = vsel %vm372_vm0, %v357_v31, 0.0  ;;  %v401_v20 = vsel %vm372_vm0, %v359_v13, 0.0  ;;  %v403_v18 = vsel %vm372_vm0, %v360_v61, 0.0 }
  0x8f   : > { %1656 = vmatprep.subr.bf16.mxu0 %v1804_v1  ;;  %v402_v19 = vadd.f32 %v401_v20, %v400_v7  ;;  %v404_v16 = vsel %vm372_vm0, %v362_v32, 0.0  ;;  %v406_v27 = vsel %vm372_vm0, %v361_v63, 0.0  ;;  %v407_v35 = vsel %vm372_vm0, %v363_v33, 0.0 }
  0x90   : > { %v405_v28 = vadd.f32 %v404_v16, %v403_v18  ;;  %v408_v36 = vadd.f32 %v407_v35, %v406_v27  ;;  %v573_v58 = vcombine.high %v399_v29, %v399_v29  ;;  %v580_v37 = vrot.slane %v399_v29, %v1920_v22 }
  0x91   : > { %v590_v14 = vcombine.high %v402_v19, %v402_v19  ;;  %v597_v38 = vrot.slane %v402_v19, %v1920_v22  ;;  %v2222_v40 = vmul.f32 %v2219_v39, %v254_v34  ;;  %v2225_v41 = vmul.f32 %v2219_v39, %v255_v30 }
  0x92   : > { %v587_v0 = vrot.slane %v573_v58, %v1920_v22  ;;  %v588_v42 = vcombine.high %v580_v37, %v580_v37  ;;  %v607_v11 = vcombine.high %v405_v28, %v405_v28  ;;  %v2229_v44 = vrot.slane %v405_v28, %v1920_v22 }
  0x93   : > { %v604_v45 = vrot.slane %v590_v14, %v1920_v22  ;;  %v605_v46 = vcombine.high %v597_v38, %v597_v38  ;;  %v624_v47 = vcombine.high %v408_v36, %v408_v36  ;;  %v2233_v48 = vrot.slane %v408_v36, %v1920_v22 }
  0x94   : > { %v589_v6 = vcombine.high %v587_v0, %v587_v0  ;;  %v2236_v51 = vrot.slane %v607_v11, %v1920_v22  ;;  %v622_v25 = vcombine.high %v2229_v44, %v2229_v44  ;;  %v998_v52 = vsel %vm773_vm1, %v580_v37, 0.0 }
  0x95   : > { %v606_v17 = vcombine.high %v604_v45, %v604_v45  ;;  %v2242_v57 = vrot.slane %v624_v47, %v1920_v22  ;;  %v639_v3 = vcombine.high %v2233_v48, %v2233_v48  ;;  %v999_v5 = vrot.slane %v998_v52, 4 }
  0x96   : > { %v623_v15 = vcombine.high %v2236_v51, %v2236_v51  ;;  %v1005_v23 = vsel %vm773_vm1, %v588_v42, 0.0  ;;  %v1012_v24 = vsel %vm773_vm1, %v587_v0, 0.0  ;;  %v1019_v26 = vsel %vm773_vm1, %v589_v6, 0.0 }
  0x97   : > { %v640_v9 = vcombine.high %v2242_v57, %v2242_v57  ;;  %v1000_v59 = vadd.f32 %v999_v5, %v998_v52  ;;  %v1006_v10 = vrot.slane %v1005_v23, 4  ;;  %v1013_v4 = vrot.slane %v1012_v24, 4 }
  0x98   : > { %v1020_v55 = vrot.slane %v1019_v26, 4  ;;  %v1026_v56 = vsel %vm773_vm1, %v597_v38, 0.0  ;;  %v1033_v43 = vsel %vm773_vm1, %v605_v46, 0.0  ;;  %v1040_v49 = vsel %vm773_vm1, %v604_v45, 0.0 }
  0x99   : > { %v1001_v50 = vrot.slane %v1000_v59, 2  ;;  %v1007_v60 = vadd.f32 %v1006_v10, %v1005_v23  ;;  %v1014_v12 = vadd.f32 %v1013_v4, %v1012_v24  ;;  %v1027_v53 = vrot.slane %v1026_v56, 4 }
  0x9a   : > { %v1021_v2 = vadd.f32 %v1020_v55, %v1019_v26  ;;  %v1034_v31 = vrot.slane %v1033_v43, 4  ;;  %v1041_v54 = vrot.slane %v1040_v49, 4  ;;  %v1047_v13 = vsel %vm773_vm1, %v606_v17, 0.0 }
  0x9b   : > { %v1002_v61 = vadd.f32 %v1001_v50, %v1000_v59  ;;  %v1008_v63 = vrot.slane %v1007_v60, 2  ;;  %v1015_v32 = vrot.slane %v1014_v12, 2  ;;  %v1028_v21 = vadd.f32 %v1027_v53, %v1026_v56 }
  0x9c   : > { %v1022_v33 = vrot.slane %v1021_v2, 2  ;;  %v1035_v62 = vadd.f32 %v1034_v31, %v1033_v43  ;;  %v1042_v8 = vadd.f32 %v1041_v54, %v1040_v49  ;;  %v1048_v29 = vrot.slane %v1047_v13, 4 }
  0x9d   : > { %v1003_v7 = vrot.slane %v1002_v61, 1  ;;  %v1009_v20 = vadd.f32 %v1008_v63, %v1007_v60  ;;  %v1016_v18 = vadd.f32 %v1015_v32, %v1014_v12  ;;  %v1029_v34 = vrot.slane %v1028_v21, 2 }
  0x9e   : > { %v1023_v30 = vadd.f32 %v1022_v33, %v1021_v2  ;;  %v1036_v19 = vrot.slane %v1035_v62, 2  ;;  %v1043_v16 = vrot.slane %v1042_v8, 2  ;;  %v1049_v27 = vadd.f32 %v1048_v29, %v1047_v13 }
  0x9f   : > { %v2257_v35 = vadd.f32 %v1003_v7, %v1002_v61  ;;  %v1010_v28 = vrot.slane %v1009_v20, 1  ;;  %v1017_v36 = vrot.slane %v1016_v18, 1  ;;  %v1030_v58 = vadd.f32 %v1029_v34, %v1028_v21 }
  0xa0   : > { %v1024_v37 = vrot.slane %v1023_v30, 1  ;;  %v1037_v14 = vadd.f32 %v1036_v19, %v1035_v62  ;;  %v1044_v38 = vadd.f32 %v1043_v16, %v1042_v8  ;;  %v1050_v0 = vrot.slane %v1049_v27, 2 }
  0xa1   : > { %v2259_v42 = vadd.f32 %v1010_v28, %v1009_v20  ;;  %v2261_v11 = vadd.f32 %v1017_v36, %v1016_v18  ;;  %v1031_v45 = vrot.slane %v1030_v58, 1  ;;  %v1054_v46 = vsel %vm773_vm1, %v2229_v44, 0.0 }
  0xa2   : > { %v2265_v47 = vadd.f32 %v1024_v37, %v1023_v30  ;;  %v1038_v6 = vrot.slane %v1037_v14, 1  ;;  %v1045_v52 = vrot.slane %v1044_v38, 1  ;;  %v1051_v17 = vadd.f32 %v1050_v0, %v1049_v27 }
  0xa3   : > { %v2267_v5 = vadd.f32 %v1031_v45, %v1030_v58  ;;  %v1055_v23 = vrot.slane %v1054_v46, 4  ;;  %v1061_v24 = vsel %vm773_vm1, %v622_v25, 0.0  ;;  %v1068_v26 = vsel %vm773_vm1, %v2236_v51, 0.0 }
  0xa4   : > { %v2272_v59 = vadd.f32 %v1038_v6, %v1037_v14  ;;  %v2274_v10 = vadd.f32 %v1045_v52, %v1044_v38  ;;  %v1052_v4 = vrot.slane %v1051_v17, 1  ;;  %v1062_v55 = vrot.slane %v1061_v24, 4 }
  0xa5   : > { %v1056_v44 = vadd.f32 %v1055_v23, %v1054_v46  ;;  %v1069_v56 = vrot.slane %v1068_v26, 4  ;;  %v1075_v43 = vsel %vm773_vm1, %v623_v15, 0.0  ;;  %v1082_v49 = vsel %vm773_vm1, %v2233_v48, 0.0 }
  0xa6   : > { %v2279_v50 = vadd.f32 %v1052_v4, %v1051_v17  ;;  %v1063_v60 = vadd.f32 %v1062_v55, %v1061_v24  ;;  %v1076_v25 = vrot.slane %v1075_v43, 4  ;;  %v1083_v12 = vrot.slane %v1082_v49, 4 }
  0xa7   : > { %v1057_v53 = vrot.slane %v1056_v44, 2  ;;  %v1070_v51 = vadd.f32 %v1069_v56, %v1068_v26  ;;  %v1089_v2 = vsel %vm773_vm1, %v639_v3, 0.0  ;;  %v1096_v31 = vsel %vm773_vm1, %v2242_v57, 0.0 }
  0xa8   : > { %v1064_v54 = vrot.slane %v1063_v60, 2  ;;  %v1077_v15 = vadd.f32 %v1076_v25, %v1075_v43  ;;  %v1084_v13 = vadd.f32 %v1083_v12, %v1082_v49  ;;  %v1090_v61 = vrot.slane %v1089_v2, 4 }
  0xa9   : > { %v1058_v63 = vadd.f32 %v1057_v53, %v1056_v44  ;;  %v1071_v32 = vrot.slane %v1070_v51, 2  ;;  %v1097_v21 = vrot.slane %v1096_v31, 4  ;;  %v1103_v33 = vsel %vm773_vm1, %v640_v9, 0.0 }
  0xaa   : > { %v1065_v62 = vadd.f32 %v1064_v54, %v1063_v60  ;;  %v1078_v8 = vrot.slane %v1077_v15, 2  ;;  %v1085_v48 = vrot.slane %v1084_v13, 2  ;;  %v1091_v29 = vadd.f32 %v1090_v61, %v1089_v2 }
  0xab   : > { %v1059_v3 = vrot.slane %v1058_v63, 1  ;;  %v1072_v7 = vadd.f32 %v1071_v32, %v1070_v51  ;;  %v1098_v20 = vadd.f32 %v1097_v21, %v1096_v31  ;;  %v1104_v18 = vrot.slane %v1103_v33, 4  ;;  %v256_v32 = vld [vmem:[%s1899_s9 + $0xd0] sm:$0xff]  ;;  %v257_v21 = vld [vmem:[%s1899_s9 + $0xd8] sm:$0xff] }
  0xac   : > { %v1066_v34 = vrot.slane %v1065_v62, 1  ;;  %v1079_v30 = vadd.f32 %v1078_v8, %v1077_v15  ;;  %v1086_v19 = vadd.f32 %v1085_v48, %v1084_v13  ;;  %v1092_v16 = vrot.slane %v1091_v29, 2 }
  0xad   : > { %v1060_v27 = vadd.f32 %v1059_v3, %v1058_v63  ;;  %v1073_v28 = vrot.slane %v1072_v7, 1  ;;  %v1099_v36 = vrot.slane %v1098_v20, 2  ;;  %v1105_v58 = vadd.f32 %v1104_v18, %v1103_v33  ;;  %v259_v3 = vld [vmem:[%s1899_s9 + $0xe8] sm:$0xff] }
  0xae   : > { %v1067_v37 = vadd.f32 %v1066_v34, %v1065_v62  ;;  %v1080_v57 = vrot.slane %v1079_v30, 1  ;;  %v1087_v14 = vrot.slane %v1086_v19, 1  ;;  %v1093_v9 = vadd.f32 %v1092_v16, %v1091_v29  ;;  %v258_v29 = vld [vmem:[%s1899_s9 + $0xe0] sm:$0xff] }
  0xaf   : > { %v1074_v38 = vadd.f32 %v1073_v28, %v1072_v7  ;;  %v1100_v0 = vadd.f32 %v1099_v36, %v1098_v20  ;;  %v1106_v45 = vrot.slane %v1105_v58, 2  ;;  %v1254_v46 = vpack.c.bf16 %v2257_v35, %v2257_v35 }
  0xb0   : > { %v1081_v6 = vadd.f32 %v1080_v57, %v1079_v30  ;;  %v1088_v52 = vadd.f32 %v1087_v14, %v1086_v19  ;;  %v1094_v17 = vrot.slane %v1093_v9, 1  ;;  %v1255_v23 = vpack.c.bf16 %v2259_v42, %v2259_v42  ;;  %v260_v30 = vld [vmem:[%s1899_s9 + $0xf0] sm:$0xff]  ;;  %v261_v19 = vld [vmem:[%s1899_s9 + $0xf8] sm:$0xff]  ;;  %s2432_s9 = scalar_lea.hbm %s2483_s4, %s1643_s30 }
  0xb1   : > { %v1101_v24 = vrot.slane %v1100_v0, 1  ;;  %v1107_v26 = vadd.f32 %v1106_v45, %v1105_v58  ;;  %v1256_v4 = vpack.c.bf16 %v2261_v11, %v2261_v11  ;;  %v1257_v55 = vpack.c.bf16 %v2265_v47, %v2265_v47 }
  0xb2   : > { %v1095_v44 = vadd.f32 %v1094_v17, %v1093_v9  ;;  %v1258_v56 = vpack.c.bf16 %v2267_v5, %v2267_v5  ;;  %v1259_v35 = vpack.c.bf16 %v2272_v59, %v2272_v59  ;;  %v1260_v43 = vpack.c.bf16 %v2274_v10, %v2274_v10 }
  0xb3   : > { %v1102_v49 = vadd.f32 %v1101_v24, %v1100_v0  ;;  %v1108_v42 = vrot.slane %v1107_v26, 1  ;;  %v1261_v60 = vpack.c.bf16 %v2279_v50, %v2279_v50  ;;  %v1262_v25 = vpack.c.bf16 %v1060_v27, %v1060_v27 }
  0xb4   : > { %v1263_v11 = vpack.c.bf16 %v1067_v37, %v1067_v37  ;;  %v1264_v12 = vpack.c.bf16 %v1074_v38, %v1074_v38  ;;  %v1265_v47 = vpack.c.bf16 %v1081_v6, %v1081_v6  ;;  %v1266_v53 = vpack.c.bf16 %v1088_v52, %v1088_v52  ;;  %v1723_v52 = vld [vmem:[%s2481_s2] ss:$0 sm:$0xff] }
  0xb5   : > { %v1109_v51 = vadd.f32 %v1108_v42, %v1107_v26  ;;  %v1267_v5 = vpack.c.bf16 %v1095_v44, %v1095_v44  ;;  %v1268_v2 = vpack.c.bf16 %v1102_v49, %v1102_v49  ;;  %v1383_v59 = vunpack.c.l.b16 %v1254_v46 }
  0xb6   : > { %v1384_v31 = vunpack.c.l.b16 %v1255_v23  ;;  %v1385_v10 = vunpack.c.l.b16 %v1256_v4  ;;  %v1386_v54 = vunpack.c.l.b16 %v1257_v55  ;;  %v1387_v15 = vunpack.c.l.b16 %v1258_v56 }
  0xb7   : > { %v1269_v13 = vpack.c.bf16 %v1109_v51, %v1109_v51  ;;  %v1388_v50 = vunpack.c.l.b16 %v1259_v35  ;;  %v1389_v61 = vunpack.c.l.b16 %v1260_v43  ;;  %v1390_v63 = vunpack.c.l.b16 %v1261_v60 }
  0xb8   : > { %v1391_v33 = vunpack.c.l.b16 %v1262_v25  ;;  %v1392_v62 = vunpack.c.l.b16 %v1263_v11  ;;  %v1393_v8 = vunpack.c.l.b16 %v1264_v12  ;;  %v1394_v48 = vunpack.c.l.b16 %v1265_v47 }
  0xb9   : > { %v1395_v7 = vunpack.c.l.b16 %v1266_v53  ;;  %v1396_v20 = vunpack.c.l.b16 %v1267_v5  ;;  %v1397_v18 = vunpack.c.l.b16 %v1268_v2  ;;  %v1398_v34 = vunpack.c.l.b16 %v1269_v13 }
  0xba   : > { %v1450_v16 = vsel %vm1415_vm2, %v1384_v31, %v1383_v59  ;;  %v1457_v27 = vsel %vm1415_vm2, %v1392_v62, %v1391_v33  ;;  %v296_v28 = vmul.f32 %v2219_v39, %v256_v32  ;;  %v297_v36 = vmul.f32 %v2219_v39, %v257_v21 }
  0xbb   : > { %v1451_v58 = vsel %vm1417_vm3, %v1385_v10, %v1450_v16  ;;  %v1458_v37 = vsel %vm1417_vm3, %v1393_v8, %v1457_v27  ;;  %v298_v57 = vmul.f32 %v2219_v39, %v258_v29  ;;  %v299_v14 = vmul.f32 %v2219_v39, %v259_v3 }
  0xbc   : > { %v1452_v9 = vsel %vm1419_vm4, %v1386_v54, %v1451_v58  ;;  %v1459_v38 = vsel %vm1419_vm4, %v1394_v48, %v1458_v37  ;;  %v300_v0 = vmul.f32 %v2219_v39, %v260_v30  ;;  %v301_v45 = vmul.f32 %v2219_v39, %v261_v19 }
  0xbd   : > { %v1453_v46 = vsel %vm1421_vm5, %v1387_v15, %v1452_v9  ;;  %v1460_v6 = vsel %vm1421_vm5, %v1395_v7, %v1459_v38  ;;  %v332_v17 = vadd.f32 %v1723_v52, %v2222_v40  ;;  %v333_v23 = vadd.f32 %v1723_v52, %v2225_v41 }
  0xbe   : > { %v1454_v24 = vsel %vm1423_vm6, %v1388_v50, %v1453_v46  ;;  %v1461_v26 = vsel %vm1423_vm6, %v1396_v20, %v1460_v6  ;;  %v334_v4 = vadd.f32 %v1723_v52, %v296_v28  ;;  %v335_v55 = vadd.f32 %v1723_v52, %v297_v36 }
  0xbf   : > { %v1455_v39 = vsel %vm1425_vm7, %v1389_v61, %v1454_v24  ;;  %v1462_v44 = vsel %vm1425_vm7, %v1397_v18, %v1461_v26  ;;  %v336_v56 = vadd.f32 %v1723_v52, %v298_v57  ;;  %v337_v35 = vadd.f32 %v1723_v52, %v299_v14 }
  0xc0   : > { %v1456_v43 = vsel %vm1427_vm8, %v1390_v63, %v1455_v39  ;;  %v1463_v49 = vsel %vm1427_vm8, %v1398_v34, %v1462_v44  ;;  %v338_v42 = vadd.f32 %v1723_v52, %v300_v0  ;;  %v339_v40 = vadd.f32 %v1723_v52, %v301_v45 }
  0xc1   : > { %v1480_v60 = vpack.c.b16 %v1463_v49, %v1456_v43  ;;  %v364_v41 = vmax.f32 %v332_v17, 0.0  ;;  %v365_v25 = vmax.f32 %v333_v23, 0.0  ;;  %v366_v11 = vmax.f32 %v334_v4, 0.0 }
  0xc2   : > { %v367_v12 = vmax.f32 %v335_v55, 0.0  ;;  %v368_v47 = vmax.f32 %v336_v56, 0.0  ;;  %v369_v53 = vmax.f32 %v337_v35, 0.0  ;;  %v370_v51 = vmax.f32 %v338_v42, 0.0 }
  0xc3   : > { %v1492_v5 = vsel %vm372_vm0, %v1480_v60, 0  ;;  %v371_v2 = vmax.f32 %v339_v40, 0.0  ;;  %v409_v59 = vsel %vm372_vm0, %v364_v41, 0.0  ;;  %v410_v31 = vsel %vm372_vm0, %v366_v11, 0.0 }
  0xc4   : > { %1657 = vmatpush3.bf16.xpose.msra.mxu0 %v1492_v5  ;;  %v411_v10 = vadd.f32 %v410_v31, %v409_v59  ;;  %v412_v54 = vsel %vm372_vm0, %v365_v25, 0.0  ;;  %v413_v15 = vsel %vm372_vm0, %v367_v12, 0.0  ;;  %v415_v13 = vsel %vm372_vm0, %v368_v47, 0.0 }
  0xc5   : > { %1658 = vmatprep.subr.bf16.mxu0 %v1804_v1  ;;  %v414_v50 = vadd.f32 %v413_v15, %v412_v54  ;;  %v416_v61 = vsel %vm372_vm0, %v370_v51, 0.0  ;;  %v418_v63 = vsel %vm372_vm0, %v369_v53, 0.0  ;;  %v419_v32 = vsel %vm372_vm0, %v371_v2, 0.0 }
  0xc6   : > { %v417_v21 = vadd.f32 %v416_v61, %v415_v13  ;;  %v420_v33 = vadd.f32 %v419_v32, %v418_v63  ;;  %v641_v62 = vcombine.high %v411_v10, %v411_v10  ;;  %v648_v8 = vrot.slane %v411_v10, %v1920_v22 }
  0xc7   : > { %v658_v48 = vcombine.high %v414_v50, %v414_v50  ;;  %v665_v29 = vrot.slane %v414_v50, %v1920_v22 }
  0xc8   : > { %v655_v3 = vrot.slane %v641_v62, %v1920_v22  ;;  %v656_v7 = vcombine.high %v648_v8, %v648_v8  ;;  %v675_v20 = vcombine.high %v417_v21, %v417_v21  ;;  %v692_v34 = vcombine.high %v420_v33, %v420_v33 }
  0xc9   : > { %v672_v18 = vrot.slane %v658_v48, %v1920_v22  ;;  %v673_v19 = vcombine.high %v665_v29, %v665_v29  ;;  %v1110_v16 = vsel %vm773_vm1, %v648_v8, 0.0  ;;  %v682_v27 = vrot.slane %v417_v21, %v1920_v22 }
  0xca   : > { %v657_v30 = vcombine.high %v655_v3, %v655_v3  ;;  %v2356_v28 = vrot.slane %v675_v20, %v1920_v22  ;;  %v2359_v36 = vrot.slane %v420_v33, %v1920_v22  ;;  %v1111_v58 = vrot.slane %v1110_v16, 4 }
  0xcb   : > { %v674_v37 = vcombine.high %v672_v18, %v672_v18  ;;  %v1117_v57 = vsel %vm773_vm1, %v656_v7, 0.0  ;;  %v1124_v1 = vsel %vm773_vm1, %v655_v3, 0.0  ;;  %v2365_v9 = vrot.slane %v692_v34, %v1920_v22 }
  0xcc   : > { %v1131_v14 = vsel %vm773_vm1, %v657_v30, 0.0  ;;  %v1112_v38 = vadd.f32 %v1111_v58, %v1110_v16  ;;  %v1118_v0 = vrot.slane %v1117_v57, 4  ;;  %v1125_v45 = vrot.slane %v1124_v1, 4 }
  0xcd   : > { %v1132_v46 = vrot.slane %v1131_v14, 4  ;;  %v1138_v6 = vsel %vm773_vm1, %v665_v29, 0.0  ;;  %v1145_v52 = vsel %vm773_vm1, %v673_v19, 0.0  ;;  %v1152_v17 = vsel %vm773_vm1, %v672_v18, 0.0 }
  0xce   : > { %v1113_v23 = vrot.slane %v1112_v38, 2  ;;  %v1119_v24 = vadd.f32 %v1118_v0, %v1117_v57  ;;  %v1126_v26 = vadd.f32 %v1125_v45, %v1124_v1  ;;  %v1139_v4 = vrot.slane %v1138_v6, 4 }
  0xcf   : > { %v1133_v55 = vadd.f32 %v1132_v46, %v1131_v14  ;;  %v1146_v39 = vrot.slane %v1145_v52, 4  ;;  %v1153_v44 = vrot.slane %v1152_v17, 4  ;;  %v1159_v22 = vsel %vm773_vm1, %v674_v37, 0.0 }
  0xd0   : > { %v1114_v56 = vadd.f32 %v1113_v23, %v1112_v38  ;;  %v1120_v35 = vrot.slane %v1119_v24, 2  ;;  %v1127_v43 = vrot.slane %v1126_v26, 2  ;;  %v1140_v49 = vadd.f32 %v1139_v4, %v1138_v6 }
  0xd1   : > { %v1134_v42 = vrot.slane %v1133_v55, 2  ;;  %v1147_v40 = vadd.f32 %v1146_v39, %v1145_v52  ;;  %v1154_v60 = vadd.f32 %v1153_v44, %v1152_v17  ;;  %v1160_v41 = vrot.slane %v1159_v22, 4 }
  0xd2   : > { %v1115_v25 = vrot.slane %v1114_v56, 1  ;;  %v1121_v11 = vadd.f32 %v1120_v35, %v1119_v24  ;;  %v1128_v12 = vadd.f32 %v1127_v43, %v1126_v26  ;;  %v1141_v47 = vrot.slane %v1140_v49, 2 }
  0xd3   : > { %v1135_v53 = vadd.f32 %v1134_v42, %v1133_v55  ;;  %v1148_v51 = vrot.slane %v1147_v40, 2  ;;  %v1155_v5 = vrot.slane %v1154_v60, 2  ;;  %v1161_v2 = vadd.f32 %v1160_v41, %v1159_v22 }
  0xd4   : > { %v690_v59 = vcombine.high %v682_v27, %v682_v27  ;;  %v1122_v31 = vrot.slane %v1121_v11, 1  ;;  %v1129_v10 = vrot.slane %v1128_v12, 1  ;;  %v1142_v54 = vadd.f32 %v1141_v47, %v1140_v49 }
  0xd5   : > { %v1136_v15 = vrot.slane %v1135_v53, 1  ;;  %v1149_v13 = vadd.f32 %v1148_v51, %v1147_v40  ;;  %v1156_v50 = vadd.f32 %v1155_v5, %v1154_v60  ;;  %v1162_v61 = vrot.slane %v1161_v2, 2 }
  0xd6   : > { %v691_v63 = vcombine.high %v2356_v28, %v2356_v28  ;;  %v707_v32 = vcombine.high %v2359_v36, %v2359_v36  ;;  %v708_v21 = vcombine.high %v2365_v9, %v2365_v9  ;;  %v1166_v33 = vsel %vm773_vm1, %v682_v27, 0.0 }
  0xd7   : > { %v2378_v62 = vadd.f32 %v1115_v25, %v1114_v56  ;;  %v2380_v8 = vadd.f32 %v1122_v31, %v1121_v11  ;;  %v2382_v48 = vadd.f32 %v1129_v10, %v1128_v12  ;;  %v1143_v29 = vrot.slane %v1142_v54, 1 }
  0xd8   : > { %v2384_v3 = vadd.f32 %v1136_v15, %v1135_v53  ;;  %v1167_v7 = vrot.slane %v1166_v33, 4  ;;  %v1173_v20 = vsel %vm773_vm1, %v690_v59, 0.0  ;;  %v1180_v18 = vsel %vm773_vm1, %v2356_v28, 0.0 }
  0xd9   : > { %v1150_v34 = vrot.slane %v1149_v13, 1  ;;  %v1157_v30 = vrot.slane %v1156_v50, 1  ;;  %v1163_v19 = vadd.f32 %v1162_v61, %v1161_v2  ;;  %v1174_v16 = vrot.slane %v1173_v20, 4 }
  0xda   : > { %v1168_v27 = vadd.f32 %v1167_v7, %v1166_v33  ;;  %v1181_v58 = vrot.slane %v1180_v18, 4  ;;  %v1187_v37 = vsel %vm773_vm1, %v691_v63, 0.0  ;;  %v1194_v57 = vsel %vm773_vm1, %v2359_v36, 0.0 }
  0xdb   : > { %v2392_v1 = vadd.f32 %v1143_v29, %v1142_v54  ;;  %v1175_v14 = vadd.f32 %v1174_v16, %v1173_v20  ;;  %v1188_v38 = vrot.slane %v1187_v37, 4  ;;  %v1195_v0 = vrot.slane %v1194_v57, 4 }
  0xdc   : > { %v1169_v45 = vrot.slane %v1168_v27, 2  ;;  %v1182_v46 = vadd.f32 %v1181_v58, %v1180_v18  ;;  %v1201_v28 = vsel %vm773_vm1, %v707_v32, 0.0  ;;  %v1208_v6 = vsel %vm773_vm1, %v2365_v9, 0.0 }
  0xdd   : > { %v1176_v52 = vrot.slane %v1175_v14, 2  ;;  %v1189_v17 = vadd.f32 %v1188_v38, %v1187_v37  ;;  %v1196_v23 = vadd.f32 %v1195_v0, %v1194_v57  ;;  %v1202_v24 = vrot.slane %v1201_v28, 4 }
  0xde   : > { %v1170_v26 = vadd.f32 %v1169_v45, %v1168_v27  ;;  %v1183_v4 = vrot.slane %v1182_v46, 2  ;;  %v1209_v55 = vrot.slane %v1208_v6, 4  ;;  %v1215_v36 = vsel %vm773_vm1, %v708_v21, 0.0 }
  0xdf   : > { %v1177_v39 = vadd.f32 %v1176_v52, %v1175_v14  ;;  %v1190_v44 = vrot.slane %v1189_v17, 2  ;;  %v1197_v22 = vrot.slane %v1196_v23, 2  ;;  %v1203_v56 = vadd.f32 %v1202_v24, %v1201_v28 }
  0xe0   : > { %v1171_v35 = vrot.slane %v1170_v26, 1  ;;  %v1184_v43 = vadd.f32 %v1183_v4, %v1182_v46  ;;  %v1210_v49 = vadd.f32 %v1209_v55, %v1208_v6  ;;  %v1216_v42 = vrot.slane %v1215_v36, 4 }
  0xe1   : > { %v1178_v40 = vrot.slane %v1177_v39, 1  ;;  %v1191_v60 = vadd.f32 %v1190_v44, %v1189_v17  ;;  %v1198_v9 = vadd.f32 %v1197_v22, %v1196_v23  ;;  %v1204_v41 = vrot.slane %v1203_v56, 2 }
  0xe2   : > { %v1164_v25 = vrot.slane %v1163_v19, 1  ;;  %v1185_v11 = vrot.slane %v1184_v43, 1  ;;  %v1211_v12 = vrot.slane %v1210_v49, 2  ;;  %v1217_v47 = vadd.f32 %v1216_v42, %v1215_v36 }
  0xe3   : > { %v1151_v53 = vadd.f32 %v1150_v34, %v1149_v13  ;;  %v1192_v51 = vrot.slane %v1191_v60, 1  ;;  %v1199_v5 = vrot.slane %v1198_v9, 1  ;;  %v1205_v2 = vadd.f32 %v1204_v41, %v1203_v56 }
  0xe4   : > { %v1158_v59 = vadd.f32 %v1157_v30, %v1156_v50  ;;  %v1172_v31 = vadd.f32 %v1171_v35, %v1170_v26  ;;  %v1212_v10 = vadd.f32 %v1211_v12, %v1210_v49  ;;  %v1218_v54 = vrot.slane %v1217_v47, 2 }
  0xe5   : > { %v1179_v15 = vadd.f32 %v1178_v40, %v1177_v39  ;;  %v1186_v61 = vadd.f32 %v1185_v11, %v1184_v43  ;;  %v1193_v63 = vadd.f32 %v1192_v51, %v1191_v60  ;;  %v1206_v32 = vrot.slane %v1205_v2, 1 }
  0xe6   : > { %v1165_v21 = vadd.f32 %v1164_v25, %v1163_v19  ;;  %v1200_v33 = vadd.f32 %v1199_v5, %v1198_v9  ;;  %v1213_v29 = vrot.slane %v1212_v10, 1  ;;  %v1219_v7 = vadd.f32 %v1218_v54, %v1217_v47 }
  0xe7   : > { %v1207_v20 = vadd.f32 %v1206_v32, %v1205_v2  ;;  %v1270_v18 = vpack.c.bf16 %v2378_v62, %v2378_v62  ;;  %v1271_v13 = vpack.c.bf16 %v2380_v8, %v2380_v8  ;;  %v1272_v50 = vpack.c.bf16 %v2382_v48, %v2382_v48 }
  0xe8   : > { %v1214_v34 = vadd.f32 %v1213_v29, %v1212_v10  ;;  %v1220_v30 = vrot.slane %v1219_v7, 1  ;;  %v1273_v16 = vpack.c.bf16 %v2384_v3, %v2384_v3  ;;  %v1274_v19 = vpack.c.bf16 %v2392_v1, %v2392_v1 }
  0xe9   : > { %v1278_v27 = vpack.c.bf16 %v1172_v31, %v1172_v31  ;;  %v1279_v58 = vpack.c.bf16 %v1179_v15, %v1179_v15  ;;  %v1280_v37 = vpack.c.bf16 %v1186_v61, %v1186_v61  ;;  %v1281_v57 = vpack.c.bf16 %v1193_v63, %v1193_v63 }
  0xea   : > { %v1221_v14 = vadd.f32 %v1220_v30, %v1219_v7  ;;  %v1275_v62 = vpack.c.bf16 %v1151_v53, %v1151_v53  ;;  %v1276_v38 = vpack.c.bf16 %v1158_v59, %v1158_v59  ;;  %v1282_v0 = vpack.c.bf16 %v1200_v33, %v1200_v33  ;;  %v1286_v59 = vld [vmem:[%s2482_s3] sm:$0x1] }
  0xeb   : > { %v1277_v8 = vpack.c.bf16 %v1165_v21, %v1165_v21  ;;  %v1283_v45 = vpack.c.bf16 %v1207_v20, %v1207_v20  ;;  %v1399_v46 = vunpack.c.l.b16 %v1270_v18  ;;  %v1400_v48 = vunpack.c.l.b16 %v1271_v13 }
  0xec   : > { %v1284_v28 = vpack.c.bf16 %v1214_v34, %v1214_v34  ;;  %v1285_v6 = vpack.c.bf16 %v1221_v14, %v1221_v14  ;;  %v1401_v52 = vunpack.c.l.b16 %v1272_v50  ;;  %v1402_v17 = vunpack.c.l.b16 %v1273_v16 }
  0xed   : > { %v1407_v3 = vunpack.c.l.b16 %v1278_v27  ;;  %v1408_v23 = vunpack.c.l.b16 %v1279_v58  ;;  %v1409_v24 = vunpack.c.l.b16 %v1280_v37  ;;  %v1410_v1 = vunpack.c.l.b16 %v1281_v57 }
  0xee   : > { %v1403_v26 = vunpack.c.l.b16 %v1274_v19  ;;  %v1411_v4 = vunpack.c.l.b16 %v1282_v0  ;;  %v1404_v55 = vunpack.c.l.b16 %v1275_v62  ;;  %v1412_v36 = vunpack.c.l.b16 %v1283_v45 }
  0xef   : > { %v1464_v39 = vsel %vm1415_vm2, %v1400_v48, %v1399_v46  ;;  %v1471_v44 = vsel %vm1415_vm2, %v1408_v23, %v1407_v3  ;;  %v1405_v22 = vunpack.c.l.b16 %v1276_v38  ;;  %v1413_v56 = vunpack.c.l.b16 %v1284_v28 }
  0xf0   : > { %v1465_v35 = vsel %vm1417_vm3, %v1401_v52, %v1464_v39  ;;  %v1472_v43 = vsel %vm1417_vm3, %v1409_v24, %v1471_v44  ;;  %v1406_v49 = vunpack.c.l.b16 %v1277_v8  ;;  %v1414_v42 = vunpack.c.l.b16 %v1285_v6 }
  0xf1   : > { %v1466_v40 = vsel %vm1419_vm4, %v1402_v17, %v1465_v35  ;;  %v1473_v60 = vsel %vm1419_vm4, %v1410_v1, %v1472_v43 }
  0xf2   : > { %v1467_v9 = vsel %vm1421_vm5, %v1403_v26, %v1466_v40  ;;  %v1474_v41 = vsel %vm1421_vm5, %v1411_v4, %v1473_v60 }
  0xf3   : > { %v1468_v25 = vsel %vm1423_vm6, %v1404_v55, %v1467_v9  ;;  %v1475_v11 = vsel %vm1423_vm6, %v1412_v36, %v1474_v41 }
  0xf4   : > { %v1469_v12 = vsel %vm1425_vm7, %v1405_v22, %v1468_v25  ;;  %v1476_v47 = vsel %vm1425_vm7, %v1413_v56, %v1475_v11 }
  0xf5   : > { %v1470_v53 = vsel %vm1427_vm8, %v1406_v49, %v1469_v12  ;;  %v1477_v51 = vsel %vm1427_vm8, %v1414_v42, %v1476_v47 }
  0xf6   : > { %v1481_v5 = vpack.c.b16 %v1477_v51, %v1470_v53 }
  0xf8   : > { %v1495_v2 = vsel %vm372_vm0, %v1481_v5, 0 }
  0xf9   : > { %1659 = vmatpush3.bf16.xpose.msra.mxu0 %v1495_v2 }
 0x100   : > { %1661 = vmatmul.mubr.msk.bf16.vlgmr.msra.gmra.mrb[0].mxu0 %vm372_vm0, %v1286_v59 }
 0x1d3   : > { %v1531_v31 = vpop.f32.mrb[0].mxu0 }
 0x1d4   : > { %1538 = vst.msk [vmem:[%s217_s5] sm:$0x3] %vm1537_vm10, %v1531_v31  ;;  %v1662_v10 = vpop.f32.mrb[1].mxu0 }
 0x1d5   : > { %v1534_v54 = vpop.f32.mrb[2].mxu0 }
 0x1d6   : > { %1737 = shalt.err (!%p1734_p5)
}
 0x1d7   : > { %s1738_s14 = scalar_lea.hbm %s2432_s9, 32  ;;  %s1742_s24 = scalar_lea.hbm %s2483_s4, 64 }
 0x1d8   : > { %p1739_p6 = scmp.ne.s32.totalorder %s2432_s9, %s1738_s14  ;;  %p1743_p10 = scmp.lt.u32.totalorder %s2432_s9, %s2483_s4 }
 0x1d9   : > { %p1744_p11 = scmp.lt.u32.totalorder %s1742_s24, %s1738_s14  ;;  %p1746_p13 = scmp.lt.u32.totalorder %s1738_s14, %s2432_s9 }
 0x1da   : > { %p1740_p7 = pnand %p1739_p6, %p1873_p4 }
 0x1db   : > { %p1745_p12 = por %p1744_p11, %p1743_p10 }
 0x1dc   : > { %p1741_p9 = pneg %p1740_p7 }
 0x1dd   : > { %p1747_p0 = por %p1746_p13, %p1745_p12 }
 0x1df   : > { %p1748_p1 = pnand %p1747_p0, %p1741_p9 }
 0x1e1   : > { %1751 = shalt.err (!%p1748_p1)
}
 0x1e2   : > { %1664 = dma.vmem_to_hbm [thread:$0]  (%p1873_p4), %s2434_s6, 32, %s2432_s9, %s1540_s10   ;;  %v1663_v15 = vpop.f32.mrb[3].mxu0 }
 0x1e3 PF: > { %p1670_p2 = scmp.ge.s32.totalorder %s1802_s20, 2  ;;  %s1566_s30 = sand.u32 1, %s1782_s15  }
 0x1e4   : > { %s1567_s5 = scalar_lea.sflag [#allocation3], %s1566_s30 }
 0x1e5   : > { %p1667_p3 = pnand %p1670_p2, %p1880_p8 }
 0x1e7   : > { %1777 = dma.done.wait (!%p1667_p3), %s1567_s5, 32  }
 0x1e8   : > { %1779 = vsyncadd (!%p1667_p3), %s1567_s5, 4294967264  ;;  %s17_s20 = sadd.s32 1, %s1802_s20   ;;  %s2486_s15 = smov %s1786_s16 }
 0x1e9   : > { %p14_p5 = scmp.ge.s32.totalorder %s17_s20, 4   ;;  %s2487_s16 = smov %s1790_s17 }
 0x1ea   : > { %s2488_s17 = smov %s1886_s28  ;;  %s2489_s18 = smov %s1798_s19 }
 0x1eb   : > { %s2490_s19 = smov %s2492_s23  ;;  %16 = sbr.rel (!%p14_p5) target bundleno = 4 (0x4), region = 71 }
 0x1f2   :  { %1572 = vsyncpa [#allocation3], 1 }
 0x1f3   :  { %1574 = vsyncpa [#allocation3 + $0x1], 1 }

</bundles_post_ra>
